<compile_context>
chip_gen: v7x
topology: tpu7x:2x2x1
jax: 0.10.0
libtpu: 0.0.40
codegen_flags: <defaults>
</compile_context>

<pallas_src>
import jax
import jax.numpy as jnp
from jax import lax
from jax.experimental import pallas as pl
from jax.experimental.pallas import tpu as pltpu


def _pick_tile(dim, target, aligns):
    """Largest tile <= target dividing `dim`, aligned to one of `aligns`
    (tried in order); falls back to the full dimension (always legal)."""
    if dim <= target:
        return dim
    for align in aligns:
        t = (target // align) * align
        while t >= align:
            if dim % t == 0:
                return t
            t -= align
    return dim


# ---------------------------------------------------------------------------
# Fused (x, y) QKV projection — weight-resident, no reduction grid axis.
#   x2d, y2d: (M, K) f32 ; wi, wl: (K, 3D) bf16  ->  (M, 3D) bf16 each
# ---------------------------------------------------------------------------
def _qkv_proj_kernel(x_ref, y_ref, wi_ref, wl_ref, io_ref, lo_ref):
    # In-kernel bf16 cast: avoids a separate stack/cast HBM round trip.
    xb = x_ref[...].astype(jnp.bfloat16)
    yb = y_ref[...].astype(jnp.bfloat16)
    io_ref[...] = jnp.dot(xb, wi_ref[...],
                          preferred_element_type=jnp.float32).astype(io_ref.dtype)
    lo_ref[...] = jnp.dot(yb, wl_ref[...],
                          preferred_element_type=jnp.float32).astype(lo_ref.dtype)


def pallas_qkv_projection(x2d, y2d, wi, wl, *, tm=512, tn=1536):
    M, K = x2d.shape
    _, Nout = wi.shape
    tm = _pick_tile(M, tm, (256, 16))       # 256-preferred, 16 for bf16 packing
    tn = _pick_tile(Nout, tn, (256, 128))   # lane-aligned, as wide as practical

    # M innermost: the weight blocks' index_map is constant across it, so the
    # (K, tn) weight tiles stay VMEM-resident instead of being re-DMA'd M/tm
    # times.  No k axis -> no accumulator scratch, one MXU dot per step.
    grid = (Nout // tn, M // tm)
    return pl.pallas_call(
        _qkv_proj_kernel,
        out_shape=(jax.ShapeDtypeStruct((M, Nout), jnp.bfloat16),
                   jax.ShapeDtypeStruct((M, Nout), jnp.bfloat16)),
        grid=grid,
        in_specs=[
            pl.BlockSpec((tm, K), lambda j, i: (i, 0)),
            pl.BlockSpec((tm, K), lambda j, i: (i, 0)),
            pl.BlockSpec((K, tn), lambda j, i: (0, j)),   # invariant across i
            pl.BlockSpec((K, tn), lambda j, i: (0, j)),   # invariant across i
        ],
        out_specs=(pl.BlockSpec((tm, tn), lambda j, i: (i, j)),
                   pl.BlockSpec((tm, tn), lambda j, i: (i, j))),
        compiler_params=pltpu.CompilerParams(
            dimension_semantics=("parallel", "parallel"),
            # ~20-30 MiB footprint at DiT scale; 48 MiB is still safe on
            # v7x (64 MiB physical) and trivially safe on v5e/v6e (128 MiB).
            vmem_limit_bytes=48 * 1024 * 1024,
        ),
    )(x2d, y2d, wi, wl)


# ---------------------------------------------------------------------------
# Flash-style cross-attention: grid = (batch, head, q-tile, kv-tile).
# q comes from q_src, k/v from kv_src; both are (N, T, 3D) with the standard
# [q | k | v] column layout, per-head columns selected by the BlockSpec.
# ---------------------------------------------------------------------------
def _flash_attn_kernel(scal_ref, q_ref, k_ref, v_ref, o_ref,
                       m_sc, l_sc, acc_sc):
    ki = pl.program_id(3)

    @pl.when(ki == 0)
    def _():
        m_sc[...] = jnp.full_like(m_sc, -jnp.inf)
        l_sc[...] = jnp.zeros_like(l_sc)
        acc_sc[...] = jnp.zeros_like(acc_sc)

    # (tq, hd) x (tkv, hd) contracting last dims: no transpose / XLU work.
    s = lax.dot_general(q_ref[0], k_ref[0], (((1,), (1,)), ((), ())),
                        preferred_element_type=jnp.float32)        # (tq, tkv)

    m_prev = m_sc[...]
    m_new = jnp.maximum(m_prev, jnp.max(s, axis=-1, keepdims=True))
    alpha = jnp.exp(m_prev - m_new)
    # TODO(synk): on v6e/v7x consider bf16 exp if EUP becomes the binding slot.
    p = jnp.exp(s - m_new)                                          # unnormalized
    l_sc[...] = alpha * l_sc[...] + jnp.sum(p, axis=-1, keepdims=True)
    acc_sc[...] = alpha * acc_sc[...] + jnp.dot(
        p.astype(jnp.bfloat16), v_ref[0], preferred_element_type=jnp.float32)
    m_sc[...] = m_new

    @pl.when(ki == pl.num_programs(3) - 1)
    def _():
        # Deferred normalization + scalar_param fused into one (tq, hd) scale.
        scale = scal_ref[0] * pl.reciprocal(l_sc[...], approx=True)
        o_ref[0] = (acc_sc[...] * scale).astype(o_ref.dtype)


def pallas_flash_attention(q_src, kv_src, scalar_param, num_heads, head_dim,
                           *, tq=512, tkv=512, out_dtype=jnp.bfloat16):
    N, T, threeD = q_src.shape
    H, hd = num_heads, head_dim
    D = H * hd
    assert threeD == 3 * D
    # TODO(synk): support head_dim not a multiple of 128 via a padded
    # head-major projection layout (keeps slices / stores lane-aligned).
    assert hd % 128 == 0, "head_dim must be a multiple of 128 for this layout"

    tq = _pick_tile(T, tq, (256, 16))
    tkv = _pick_tile(T, tkv, (256, 16))
    grid = (N, H, T // tq, T // tkv)

    return pl.pallas_call(
        _flash_attn_kernel,
        out_shape=jax.ShapeDtypeStruct((N, T, D), out_dtype),
        grid=grid,
        in_specs=[
            pl.BlockSpec(memory_space=pltpu.MemorySpace.SMEM),          # scalar
            # q head h: columns [h*hd, (h+1)*hd)            -> block h
            pl.BlockSpec((1, tq, hd), lambda n, h, qi, ki: (n, qi, h)),
            # k head h: columns [D + h*hd, ...)             -> block H + h
            pl.BlockSpec((1, tkv, hd), lambda n, h, qi, ki: (n, ki, H + h)),
            # v head h: columns [2D + h*hd, ...)            -> block 2H + h
            pl.BlockSpec((1, tkv, hd), lambda n, h, qi, ki: (n, ki, 2 * H + h)),
        ],
        out_specs=pl.BlockSpec((1, tq, hd), lambda n, h, qi, ki: (n, qi, h)),
        scratch_shapes=[pltpu.VMEM((tq, 1), jnp.float32),    # running max
                        pltpu.VMEM((tq, 1), jnp.float32),    # running sum
                        pltpu.VMEM((tq, hd), jnp.float32)],  # accumulator
        compiler_params=pltpu.CompilerParams(
            dimension_semantics=("parallel", "parallel", "parallel", "arbitrary"),
            vmem_limit_bytes=32 * 1024 * 1024,   # tiled footprint is tiny
        ),
    )(scalar_param, q_src, kv_src, kv_src)


# ---------------------------------------------------------------------------
# Module wrapper
# ---------------------------------------------------------------------------
class SegAttentionPallas:
    def __init__(self, dim, num_heads=8, key=None):
        assert dim % num_heads == 0, "dim should be divisible by num_heads"
        self.dim = dim
        self.num_heads = num_heads
        self.head_dim = dim // num_heads
        if key is None:
            key = jax.random.PRNGKey(0)
        k1, k2 = jax.random.split(key)

        # nn.Linear(dim, 3*dim, bias=False) weights, torch layout (3*dim, dim).
        self.i_qkv_w = jax.random.normal(k1, (3 * dim, dim), jnp.float32) * 0.02
        self.l_qkv_w = jax.random.normal(k2, (3 * dim, dim), jnp.float32) * 0.02

        # nn.Parameter(head_dim**-0.5 * ones(H, 1, Hd))
        self.i_scale = self.head_dim ** (-0.5) * jnp.ones(
            (num_heads, 1, self.head_dim), jnp.float32)
        self.l_scale = self.head_dim ** (-0.5) * jnp.ones(
            (num_heads, 1, self.head_dim), jnp.float32)

        # Fold softmax(scale) into the q weight columns (column order in the
        # projection output is h*head_dim + d, exactly matching (H,1,Hd)).
        i_col = jnp.concatenate(
            [jax.nn.softmax(self.i_scale, axis=-1).reshape(dim),
             jnp.ones((2 * dim,), jnp.float32)])
        l_col = jnp.concatenate(
            [jax.nn.softmax(self.l_scale, axis=-1).reshape(dim),
             jnp.ones((2 * dim,), jnp.float32)])
        self.i_w_bf16 = (self.i_qkv_w.T * i_col[None, :]).astype(jnp.bfloat16)
        self.l_w_bf16 = (self.l_qkv_w.T * l_col[None, :]).astype(jnp.bfloat16)

        # nn.Parameter(torch.tensor(0.9))
        self.scalar_param = jnp.array([0.9], jnp.float32)

    def __call__(self, x, y):
        N, T, D = x.shape
        M = N * T
        x2d = x.reshape(M, D)
        y2d = y.reshape(M, D)
        # Both branch projections in ONE weight-resident pallas_call.
        i_qkv, l_qkv = pallas_qkv_projection(x2d, y2d,
                                             self.i_w_bf16, self.l_w_bf16)
        i_qkv = i_qkv.reshape(N, T, 3 * D)   # metadata-only reshape
        l_qkv = l_qkv.reshape(N, T, 3 * D)

        # x-branch: softmax(i_q @ l_k^T) @ l_v ; y-branch swaps the roles.
        x_out = pallas_flash_attention(i_qkv, l_qkv, self.scalar_param,
                                       self.num_heads, self.head_dim)
        y_out = pallas_flash_attention(l_qkv, i_qkv, self.scalar_param,
                                       self.num_heads, self.head_dim)
        return x_out, y_out

    # Pure-JAX reference mirroring the torch forward (scale applied after the
    # projection, exact softmax) with the same bf16 matmul inputs.
    def reference(self, x, y):
        N, T, D = x.shape
        H, Hd = self.num_heads, self.head_dim
        xb = x.reshape(N * T, D).astype(jnp.bfloat16)
        yb = y.reshape(N * T, D).astype(jnp.bfloat16)
        wi = self.i_qkv_w.T.astype(jnp.bfloat16)
        wl = self.l_qkv_w.T.astype(jnp.bfloat16)
        i_qkv = jnp.dot(xb, wi, preferred_element_type=jnp.float32
                        ).astype(jnp.bfloat16)
        l_qkv = jnp.dot(yb, wl, preferred_element_type=jnp.float32
                        ).astype(jnp.bfloat16)

        def split(qkv):
            q = qkv.reshape(N, T, 3, H, Hd).transpose(2, 0, 3, 1, 4)
            return q[0], q[1], q[2]

        i_q, i_k, i_v = split(i_qkv)
        l_q, l_k, l_v = split(l_qkv)
        i_sc = jax.nn.softmax(self.i_scale, axis=-1)[None]   # (1, H, 1, Hd)
        l_sc = jax.nn.softmax(self.l_scale, axis=-1)[None]
        i_q = i_q.astype(jnp.float32) * i_sc
        l_q = l_q.astype(jnp.float32) * l_sc

        n_attn = jax.nn.softmax(jnp.einsum(
            "nhtd,nhsd->nhts", i_q, l_k.astype(jnp.float32)), axis=-1)
        f_attn = jax.nn.softmax(jnp.einsum(
            "nhtd,nhsd->nhts", l_q, i_k.astype(jnp.float32)), axis=-1)
        s = self.scalar_param[0]
        xo = jnp.einsum("nhts,nhsd->nhtd", s * n_attn, l_v.astype(jnp.float32))
        yo = jnp.einsum("nhts,nhsd->nhtd", s * f_attn, i_v.astype(jnp.float32))
        return (xo.transpose(0, 2, 1, 3).reshape(N, T, D),
                yo.transpose(0, 2, 1, 3).reshape(N, T, D))


if __name__ == "__main__":
    # Small but TPU-friendly shapes: head_dim = 128 keeps all head slices
    # lane-tile aligned; all dims are multiples of (16, 128).
    N, T, D, H = 2, 128, 256, 2

    key = jax.random.PRNGKey(0)
    kx, ky, kp = jax.random.split(key, 3)
    x = jax.random.normal(kx, (N, T, D), jnp.float32)
    y = jax.random.normal(ky, (N, T, D), jnp.float32)

    attn = SegAttentionPallas(dim=D, num_heads=H, key=kp)

    x_out, y_out = attn(x, y)
    jax.block_until_ready((x_out, y_out))

    x_ref, y_ref = attn.reference(x, y)
    assert x_out.shape == (N, T, D) and y_out.shape == (N, T, D)
    assert jnp.allclose(x_out.astype(jnp.float32), x_ref,
                        atol=5e-3, rtol=5e-2), "x mismatch"
    assert jnp.allclose(y_out.astype(jnp.float32), y_ref,
                        atol=5e-3, rtol=5e-2), "y mismatch"

    print("KERNEL_OK")
</pallas_src>

<mosaic_0001>
module attributes {stable_mosaic.version = 11 : i64} {
  func.func @_qkv_proj_kernel(%arg0: i32, %arg1: i32, %arg2: memref<256x256xf32, #tpu.memory_space<vmem>>, %arg3: memref<256x256xf32, #tpu.memory_space<vmem>>, %arg4: memref<256x768xbf16, #tpu.memory_space<vmem>>, %arg5: memref<256x768xbf16, #tpu.memory_space<vmem>>, %arg6: memref<256x768xbf16, #tpu.memory_space<vmem>>, %arg7: memref<256x768xbf16, #tpu.memory_space<vmem>>) attributes {dimension_semantics = [#tpu.dimension_semantics<parallel>, #tpu.dimension_semantics<parallel>], iteration_bounds = array<i64: 1, 1>, scalar_prefetch = 0 : i64, scratch_operands = 0 : i64, tpu.core_type = #tpu.core_type<tc>, window_params = [{transform_indices = @transform_0, window_bounds = array<i64: 256, 256>}, {transform_indices = @transform_1, window_bounds = array<i64: 256, 256>}, {transform_indices = @transform_2, window_bounds = array<i64: 256, 768>}, {transform_indices = @transform_3, window_bounds = array<i64: 256, 768>}, {transform_indices = @transform_4, window_bounds = array<i64: 256, 768>}, {transform_indices = @transform_5, window_bounds = array<i64: 256, 768>}]} {
    %c0 = arith.constant 0 : index
    %c0_0 = arith.constant 0 : index
    %0 = vector.load %arg2[%c0, %c0_0] : memref<256x256xf32, #tpu.memory_space<vmem>>, vector<256x256xf32>
    %1 = arith.truncf %0 : vector<256x256xf32> to vector<256x256xbf16>
    %c0_1 = arith.constant 0 : index
    %c0_2 = arith.constant 0 : index
    %2 = vector.load %arg3[%c0_1, %c0_2] : memref<256x256xf32, #tpu.memory_space<vmem>>, vector<256x256xf32>
    %3 = arith.truncf %2 : vector<256x256xf32> to vector<256x256xbf16>
    %c0_3 = arith.constant 0 : index
    %c0_4 = arith.constant 0 : index
    %4 = vector.load %arg4[%c0_3, %c0_4] : memref<256x768xbf16, #tpu.memory_space<vmem>>, vector<256x768xbf16>
    %cst = arith.constant dense<0.000000e+00> : vector<256x768xf32>
    %5 = tpu.matmul %1, %4, %cst {dimension_numbers = #tpu.dot_dimension_numbers<[1], [0], [0], [1], [0, 0, 1, 1], [], []>} : vector<256x256xbf16>, vector<256x768xbf16>, vector<256x768xf32> -> vector<256x768xf32>
    %6 = arith.truncf %5 : vector<256x768xf32> to vector<256x768xbf16>
    %c0_5 = arith.constant 0 : index
    %c0_6 = arith.constant 0 : index
    %7 = vector.load %arg6[%c0_5, %c0_6] : memref<256x768xbf16, #tpu.memory_space<vmem>>, vector<256x768xbf16>
    tpu.vector_store %arg6[%c0_5, %c0_6], %6 {strides = array<i32>} : memref<256x768xbf16, #tpu.memory_space<vmem>>, vector<256x768xbf16>,
    %c0_7 = arith.constant 0 : index
    %c0_8 = arith.constant 0 : index
    %8 = vector.load %arg5[%c0_7, %c0_8] : memref<256x768xbf16, #tpu.memory_space<vmem>>, vector<256x768xbf16>
    %cst_9 = arith.constant dense<0.000000e+00> : vector<256x768xf32>
    %9 = tpu.matmul %3, %8, %cst_9 {dimension_numbers = #tpu.dot_dimension_numbers<[1], [0], [0], [1], [0, 0, 1, 1], [], []>} : vector<256x256xbf16>, vector<256x768xbf16>, vector<256x768xf32> -> vector<256x768xf32>
    %10 = arith.truncf %9 : vector<256x768xf32> to vector<256x768xbf16>
    %c0_10 = arith.constant 0 : index
    %c0_11 = arith.constant 0 : index
    %11 = vector.load %arg7[%c0_10, %c0_11] : memref<256x768xbf16, #tpu.memory_space<vmem>>, vector<256x768xbf16>
    tpu.vector_store %arg7[%c0_10, %c0_11], %10 {strides = array<i32>} : memref<256x768xbf16, #tpu.memory_space<vmem>>, vector<256x768xbf16>,
    return
  }
  func.func @transform_0(%arg0: i32, %arg1: i32) -> (i32, i32) {
    %c0_i32 = arith.constant 0 : i32
    %c0_i32_0 = arith.constant 0 : i32
    return %arg1, %c0_i32 : i32, i32
  }
  func.func @transform_1(%arg0: i32, %arg1: i32) -> (i32, i32) {
    %c0_i32 = arith.constant 0 : i32
    %c0_i32_0 = arith.constant 0 : i32
    return %arg1, %c0_i32 : i32, i32
  }
  func.func @transform_2(%arg0: i32, %arg1: i32) -> (i32, i32) {
    %c0_i32 = arith.constant 0 : i32
    %c0_i32_0 = arith.constant 0 : i32
    return %c0_i32, %arg0 : i32, i32
  }
  func.func @transform_3(%arg0: i32, %arg1: i32) -> (i32, i32) {
    %c0_i32 = arith.constant 0 : i32
    %c0_i32_0 = arith.constant 0 : i32
    return %c0_i32, %arg0 : i32, i32
  }
  func.func @transform_4(%arg0: i32, %arg1: i32) -> (i32, i32) {
    %c0_i32 = arith.constant 0 : i32
    return %arg1, %arg0 : i32, i32
  }
  func.func @transform_5(%arg0: i32, %arg1: i32) -> (i32, i32) {
    %c0_i32 = arith.constant 0 : i32
    return %arg1, %arg0 : i32, i32
  }
}

</mosaic_0001>

<bundles_post_ra>
// kernel: tpu_custom_call.1
= control target key start
LH: loop header
LB: loop body
LE: loop exit
PB: predicated region body
PF: predicated region fallthrough
CT: control target
= control target key end

     0   :  { %11 = vsyncpa [#allocation3], 0  ;;  %s5424_s0 = inlined_call_operand.hbm [shape: f32[256,256], index: 0, kind: input, shape index: {}]   ;;  %s5425_s1 = inlined_call_operand.hbm [shape: f32[256,256], index: 1, kind: input, shape index: {}]   ;;  %s5426_s2 = inlined_call_operand.hbm [shape: bf16[256,768], index: 2, kind: input, shape index: {}]   ;;  %s5427_s3 = inlined_call_operand.hbm [shape: bf16[256,768], index: 3, kind: input, shape index: {}]   ;;  %s5428_s4 = inlined_call_operand.hbm [shape: bf16[256,768], index: 4, kind: output, shape index: {0}]   ;;  %s5429_s5 = inlined_call_operand.hbm [shape: bf16[256,768], index: 5, kind: output, shape index: {1}]  }
   0x1   :  { %12 = vsyncpa [#allocation6], 0 }
   0x2   :  { %13 = vsyncpa [#allocation9], 0 }
   0x3   :  { %14 = vsyncpa [#allocation4], 0 }
   0x4   :  { %15 = vsyncpa [#allocation12], 0  ;;  %s4973_s18 = smov [#allocation5]   ;;  %s4974_s20 = smov [#allocation2]  }
   0x5   :  { %s33_s19 = sshll.u32 %s4973_s18, 4  ;;  %s21_s21 = sshll.u32 %s4974_s20, 4  ;;  %s34_s19 = int_to_ptr.vmem [resolvable:$true] %s33_s19  ;;  %s5013_s21 = int_to_ptr.vmem [resolvable:$true] %s21_s21 }
   0x6   :  { %s4831_s24 = scalar_lea.hbm %s5425_s1, 8192 }
   0x7   :  { %p4832_p0 = scmp.ne.s32.totalorder %s5425_s1, %s4831_s24  ;;  %p4835_p1 = scmp.lt.u32.totalorder %s4831_s24, %s5425_s1 }
   0x9   :  { %p4837_p2 = pnand %p4835_p1, %p4832_p0 }
   0xb   :  { %4840 = shalt.err (!%p4837_p2)
}
   0xc   :  { %s4841_s29 = scalar_lea.vmem %s34_s19, 8192  ;;  %p4846_p4 = scmp.lt.s32.totalorder %s34_s19, %s34_s19 }
   0xd   :  { %p4842_p3 = scmp.ne.s32.totalorder %s34_s19, %s4841_s29  ;;  %p4847_p5 = scmp.lt.s32.totalorder %s4841_s29, %s4841_s29 }
   0xf   :  { %p4848_p6 = por %p4847_p5, %p4846_p4 }
  0x11   :  { %p4849_p7 = pnand %p4848_p6, %p4842_p3 }
  0x13   :  { %4852 = shalt.err (!%p4849_p7)
}
  0x14   :  { %s4975_s30 = smov 256   ;;  %s4976_s6 = smov 16  }
  0x15   :  { %39 = dma.hbm_to_vmem [thread:$0]  %s5425_s1, 8192, %s34_s19, [#allocation6], %s4975_s30, %s4975_s30, %s4976_s6  }
  0x16   :  { %s4853_s11 = scalar_lea.hbm %s5424_s0, 8192 }
  0x17   :  { %p4854_p8 = scmp.ne.s32.totalorder %s5424_s0, %s4853_s11  ;;  %p4857_p9 = scmp.lt.u32.totalorder %s4853_s11, %s5424_s0 }
  0x19   :  { %p4859_p10 = pnand %p4857_p9, %p4854_p8 }
  0x1b   :  { %4862 = shalt.err (!%p4859_p10)
}
  0x1c   :  { %s4863_s16 = scalar_lea.vmem %s5013_s21, 8192  ;;  %p4868_p12 = scmp.lt.s32.totalorder %s5013_s21, %s5013_s21 }
  0x1d   :  { %p4864_p11 = scmp.ne.s32.totalorder %s5013_s21, %s4863_s16  ;;  %p4869_p13 = scmp.lt.s32.totalorder %s4863_s16, %s4863_s16 }
  0x1f   :  { %p4870_p0 = por %p4869_p13, %p4868_p12 }
  0x21   :  { %p4871_p1 = pnand %p4870_p0, %p4864_p11 }
  0x23   :  { %4874 = shalt.err (!%p4871_p1)
}
  0x24   :  { %27 = dma.hbm_to_vmem [thread:$0]  %s5424_s0, 8192, %s5013_s21, [#allocation3], %s4975_s30, %s4975_s30, %s4976_s6  }
  0x25   :  { %s4977_s18 = smov [#allocation7]   ;;  %s4875_s23 = scalar_lea.hbm %s5426_s2, 12288 }
  0x26   :  { %s45_s19 = sshll.u32 %s4977_s18, 4  ;;  %p4876_p2 = scmp.ne.s32.totalorder %s5426_s2, %s4875_s23  ;;  %s46_s19 = int_to_ptr.vmem [resolvable:$true] %s45_s19 }
  0x27   :  { %p4879_p3 = scmp.lt.u32.totalorder %s4875_s23, %s5426_s2 }
  0x29   :  { %p4881_p4 = pnand %p4879_p3, %p4876_p2 }
  0x2b   :  { %4884 = shalt.err (!%p4881_p4)
}
  0x2c   :  { %s4885_s28 = scalar_lea.vmem %s46_s19, 12288  ;;  %p4890_p6 = scmp.lt.s32.totalorder %s46_s19, %s46_s19 }
  0x2d   :  { %p4886_p5 = scmp.ne.s32.totalorder %s46_s19, %s4885_s28  ;;  %p4891_p7 = scmp.lt.s32.totalorder %s4885_s28, %s4885_s28 }
  0x2f   :  { %p4892_p8 = por %p4891_p7, %p4890_p6 }
  0x31   :  { %p4893_p9 = pnand %p4892_p8, %p4886_p5 }
  0x33   :  { %4896 = shalt.err (!%p4893_p9)
}
  0x34   :  { %s4978_s0 = smov 384   ;;  %s4979_s21 = smov 24  }
  0x35   :  { %51 = dma.hbm_to_vmem [thread:$0]  %s5426_s2, 12288, %s46_s19, [#allocation6], %s4978_s0, %s4978_s0, %s4979_s21  }
  0x36   :  { %s4980_s6 = smov [#allocation8]   ;;  %s4897_s10 = scalar_lea.hbm %s5427_s3, 12288 }
  0x37   :  { %s57_s7 = sshll.u32 %s4980_s6, 4  ;;  %p4898_p10 = scmp.ne.s32.totalorder %s5427_s3, %s4897_s10  ;;  %s58_s7 = int_to_ptr.vmem [resolvable:$true] %s57_s7 }
  0x38   :  { %p4901_p11 = scmp.lt.u32.totalorder %s4897_s10, %s5427_s3 }
  0x3a   :  { %p4903_p12 = pnand %p4901_p11, %p4898_p10 }
  0x3c   :  { %4906 = shalt.err (!%p4903_p12)
}
  0x3d   :  { %s4907_s15 = scalar_lea.vmem %s58_s7, 12288  ;;  %p4912_p0 = scmp.lt.s32.totalorder %s58_s7, %s58_s7 }
  0x3e   :  { %p4908_p13 = scmp.ne.s32.totalorder %s58_s7, %s4907_s15  ;;  %p4913_p1 = scmp.lt.s32.totalorder %s4907_s15, %s4907_s15 }
  0x40   :  { %p4914_p2 = por %p4913_p1, %p4912_p0 }
  0x42   :  { %p4915_p3 = pnand %p4914_p2, %p4908_p13 }
  0x44   :  { %4918 = shalt.err (!%p4915_p3)
}
  0x45   :  { %63 = dma.hbm_to_vmem [thread:$0]  %s5427_s3, 12288, %s58_s7, [#allocation9], %s4978_s0, %s4978_s0, %s4979_s21  }
  0x46   :  { %4963 = dma.done.wait [#allocation3], 8192  }
  0x47   :  { %4964 = vsyncadd [#allocation3], 4294959104 }
  0x48   :  { %4965 = dma.done.wait [#allocation6], 20480  }
  0x49   :  { %4966 = vsyncadd [#allocation6], 4294946816 }
  0x4a   :  { %4967 = dma.done.wait [#allocation9], 12288  }
  0x4b   :  { %4968 = vsyncadd [#allocation9], 4294955008  ;;  %v4543_v0 = vld [vmem:[#allocation7 + $0x4] ss:$24 sps:$4 sm:$0xff]   ;;  %v4547_v2 = vld [vmem:[#allocation7] ss:$24 sps:$4 sm:$0xff]  }
  0x4c   :  { %v4545_v1 = vld [vmem:[#allocation7 + $0xc] ss:$24 sps:$4 sm:$0xff]   ;;  %844 = vmatprep.subr.bf16.mxu0 %v4543_v0  ;;  %v4548_v3 = vld [vmem:[#allocation7 + $0x8] ss:$24 sps:$4 sm:$0xff]   ;;  %v4551_v5 = vld [vmem:[#allocation7 + $0x3c] ss:$24 sps:$4 sm:$0xff]  }
  0x4d   :  { %1037 = vmatprep.subr.bf16.mxu1 %v4545_v1  ;;  %v4549_v4 = vld [vmem:[#allocation7 + $0x34] ss:$24 sps:$4 sm:$0xff]   ;;  %845 = vmatpush1.bf16.msra.mxu0 %v4547_v2  ;;  %v4553_v6 = vld [vmem:[#allocation7 + $0x30] ss:$24 sps:$4 sm:$0xff]   ;;  %v4555_v8 = vld [vmem:[#allocation7 + $0x64] ss:$24 sps:$4 sm:$0xff]  }
  0x4e   :  { %1038 = vmatpush1.bf16.msra.mxu1 %v4548_v3  ;;  %846 = vmatprep.subr.bf16.mxu0 %v4549_v4  ;;  %v4554_v7 = vld [vmem:[#allocation7 + $0x38] ss:$24 sps:$4 sm:$0xff]   ;;  %v4557_v9 = vld [vmem:[#allocation7 + $0x6c] ss:$24 sps:$4 sm:$0xff]   ;;  %v4560_v11 = vld [vmem:[#allocation7 + $0x68] ss:$24 sps:$4 sm:$0xff]  }
  0x4f   :  { %1039 = vmatprep.subr.bf16.mxu1 %v4551_v5  ;;  %v4559_v10 = vld [vmem:[#allocation7 + $0x60] ss:$24 sps:$4 sm:$0xff]   ;;  %v4561_v12 = vld [vmem:[#allocation7 + $0x94] ss:$24 sps:$4 sm:$0xff]   ;;  %v4565_v14 = vld [vmem:[#allocation7 + $0x90] ss:$24 sps:$4 sm:$0xff]  }
  0x50   :  { %v4563_v13 = vld [vmem:[#allocation7 + $0x9c] ss:$24 sps:$4 sm:$0xff]   ;;  %v4566_v15 = vld [vmem:[#allocation7 + $0x98] ss:$24 sps:$4 sm:$0xff]   ;;  %v4569_v17 = vld [vmem:[#allocation7 + $0xcc] ss:$24 sps:$4 sm:$0xff]  }
  0x51   :  { %847 = vmatpush1.bf16.msra.mxu0 %v4553_v6  ;;  %v4567_v16 = vld [vmem:[#allocation7 + $0xc4] ss:$24 sps:$4 sm:$0xff]   ;;  %v4571_v18 = vld [vmem:[#allocation7 + $0xc0] ss:$24 sps:$4 sm:$0xff]   ;;  %v4573_v20 = vld [vmem:[#allocation7 + $0xf4] ss:$24 sps:$4 sm:$0xff]  }
  0x52   :  { %1040 = vmatpush1.bf16.msra.mxu1 %v4554_v7  ;;  %848 = vmatprep.subr.bf16.mxu0 %v4555_v8  ;;  %v4572_v19 = vld [vmem:[#allocation7 + $0xc8] ss:$24 sps:$4 sm:$0xff]   ;;  %v4575_v21 = vld [vmem:[#allocation7 + $0xfc] ss:$24 sps:$4 sm:$0xff]   ;;  %v4578_v23 = vld [vmem:[#allocation7 + $0xf8] ss:$24 sps:$4 sm:$0xff]  }
  0x53   :  { %1041 = vmatprep.subr.bf16.mxu1 %v4557_v9  ;;  %v4577_v22 = vld [vmem:[#allocation7 + $0xf0] ss:$24 sps:$4 sm:$0xff]   ;;  %v4579_v24 = vld [vmem:[#allocation7 + $0x124] ss:$24 sps:$4 sm:$0xff]   ;;  %v4583_v26 = vld [vmem:[#allocation7 + $0x120] ss:$24 sps:$4 sm:$0xff]  }
  0x54   :  { %v4581_v25 = vld [vmem:[#allocation7 + $0x12c] ss:$24 sps:$4 sm:$0xff]   ;;  %v4584_v27 = vld [vmem:[#allocation7 + $0x128] ss:$24 sps:$4 sm:$0xff]   ;;  %v4587_v29 = vld [vmem:[#allocation7 + $0x15c] ss:$24 sps:$4 sm:$0xff]  }
  0x55   :  { %849 = vmatpush1.bf16.msra.mxu0 %v4559_v10  ;;  %v4585_v28 = vld [vmem:[#allocation7 + $0x154] ss:$24 sps:$4 sm:$0xff]   ;;  %v4589_v30 = vld [vmem:[#allocation7 + $0x150] ss:$24 sps:$4 sm:$0xff]   ;;  %v4591_v32 = vld [vmem:[#allocation7 + $0x184] ss:$24 sps:$4 sm:$0xff]  }
  0x56   :  { %1042 = vmatpush1.bf16.msra.mxu1 %v4560_v11  ;;  %850 = vmatprep.subr.bf16.mxu0 %v4561_v12  ;;  %v4590_v31 = vld [vmem:[#allocation7 + $0x158] ss:$24 sps:$4 sm:$0xff]   ;;  %v4593_v33 = vld [vmem:[#allocation7 + $0x18c] ss:$24 sps:$4 sm:$0xff]   ;;  %v4596_v35 = vld [vmem:[#allocation7 + $0x188] ss:$24 sps:$4 sm:$0xff]  }
  0x57   :  { %1043 = vmatprep.subr.bf16.mxu1 %v4563_v13  ;;  %v4595_v34 = vld [vmem:[#allocation7 + $0x180] ss:$24 sps:$4 sm:$0xff]   ;;  %v4597_v36 = vld [vmem:[#allocation7 + $0x1b4] ss:$24 sps:$4 sm:$0xff]   ;;  %v4601_v38 = vld [vmem:[#allocation7 + $0x1b0] ss:$24 sps:$4 sm:$0xff]  }
  0x58   :  { %v4599_v37 = vld [vmem:[#allocation7 + $0x1bc] ss:$24 sps:$4 sm:$0xff]   ;;  %v4602_v39 = vld [vmem:[#allocation7 + $0x1b8] ss:$24 sps:$4 sm:$0xff]   ;;  %v4605_v41 = vld [vmem:[#allocation7 + $0x1ec] ss:$24 sps:$4 sm:$0xff]  }
  0x59   :  { %851 = vmatpush1.bf16.msra.mxu0 %v4565_v14  ;;  %v4603_v40 = vld [vmem:[#allocation7 + $0x1e4] ss:$24 sps:$4 sm:$0xff]   ;;  %v4607_v42 = vld [vmem:[#allocation7 + $0x1e0] ss:$24 sps:$4 sm:$0xff]   ;;  %v4609_v44 = vld [vmem:[#allocation7 + $0x214] ss:$24 sps:$4 sm:$0xff]  }
  0x5a   :  { %1044 = vmatpush1.bf16.msra.mxu1 %v4566_v15  ;;  %852 = vmatprep.subr.bf16.mxu0 %v4567_v16  ;;  %v4608_v43 = vld [vmem:[#allocation7 + $0x1e8] ss:$24 sps:$4 sm:$0xff]   ;;  %v4611_v45 = vld [vmem:[#allocation7 + $0x21c] ss:$24 sps:$4 sm:$0xff]   ;;  %v4614_v48 = vld [vmem:[#allocation7 + $0x218] ss:$24 sps:$4 sm:$0xff]  }
  0x5b   :  { %1045 = vmatprep.subr.bf16.mxu1 %v4569_v17  ;;  %v77_v46 = vld [vmem:[#allocation2 + $0x8] sm:$0xff]  ;;  %v79_v49 = vld [vmem:[#allocation2 + $0x18] sm:$0xff]  ;;  %v76_v3 = vld [vmem:[#allocation2] sm:$0xff]  ;;  %s4981_s3 = smov [#allocation10]  }
  0x5c   :  { %v4613_v47 = vld [vmem:[#allocation7 + $0x210] ss:$24 sps:$4 sm:$0xff]   ;;  %v4615_v50 = vld [vmem:[#allocation7 + $0x244] ss:$24 sps:$4 sm:$0xff]   ;;  %v5074_v51 = vpack.c.bf16 %v79_v49, %v77_v46  ;;  %v4619_v53 = vld [vmem:[#allocation7 + $0x240] ss:$24 sps:$4 sm:$0xff]  }
  0x5d   :  { %853 = vmatpush1.bf16.msra.mxu0 %v4571_v18  ;;  %v4617_v52 = vld [vmem:[#allocation7 + $0x24c] ss:$24 sps:$4 sm:$0xff]   ;;  %v4620_v54 = vld [vmem:[#allocation7 + $0x248] ss:$24 sps:$4 sm:$0xff]   ;;  %v4623_v56 = vld [vmem:[#allocation7 + $0x27c] ss:$24 sps:$4 sm:$0xff]  }
  0x5e   :  { %1046 = vmatpush1.bf16.msra.mxu1 %v4572_v19  ;;  %854 = vmatprep.subr.bf16.mxu0 %v4573_v20  ;;  %v4621_v55 = vld [vmem:[#allocation7 + $0x274] ss:$24 sps:$4 sm:$0xff]   ;;  %v4625_v57 = vld [vmem:[#allocation7 + $0x270] ss:$24 sps:$4 sm:$0xff]   ;;  %v4627_v59 = vld [vmem:[#allocation7 + $0x2a4] ss:$24 sps:$4 sm:$0xff]  }
  0x5f   :  { %1047 = vmatprep.subr.bf16.mxu1 %v4575_v21  ;;  %876 = vmatprep.mubr.bf16.mxu0 %v5074_v51  ;;  %v4626_v58 = vld [vmem:[#allocation7 + $0x278] ss:$24 sps:$4 sm:$0xff]   ;;  %v4629_v60 = vld [vmem:[#allocation7 + $0x2ac] ss:$24 sps:$4 sm:$0xff]   ;;  %v4632_v62 = vld [vmem:[#allocation7 + $0x2a8] ss:$24 sps:$4 sm:$0xff]  }
  0x60   :  { %1069 = vmatprep.mubr.bf16.mxu1 %v5074_v51  ;;  %v4631_v61 = vld [vmem:[#allocation7 + $0x2a0] ss:$24 sps:$4 sm:$0xff]   ;;  %v4633_v63 = vld [vmem:[#allocation7 + $0x2d4] ss:$24 sps:$4 sm:$0xff]   ;;  %v4637_v1 = vld [vmem:[#allocation7 + $0x2d0] ss:$24 sps:$4 sm:$0xff]  }
  0x61   :  { %855 = vmatpush1.bf16.msra.mxu0 %v4577_v22  ;;  %v4635_v0 = vld [vmem:[#allocation7 + $0x2dc] ss:$24 sps:$4 sm:$0xff]   ;;  %v4638_v2 = vld [vmem:[#allocation7 + $0x2d8] ss:$24 sps:$4 sm:$0xff]   ;;  %v81_v7 = vld [vmem:[#allocation2 + $0x28] sm:$0xff]  ;;  %s3927_s1 = sshll.u32 %s4981_s3, 4  ;;  %s3928_s1 = int_to_ptr.vmem [resolvable:$true] %s3927_s1 }
  0x62   :  { %1048 = vmatpush1.bf16.msra.mxu1 %v4578_v23  ;;  %856 = vmatprep.subr.bf16.mxu0 %v4579_v24  ;;  %v78_v4 = vld [vmem:[#allocation2 + $0x10] sm:$0xff]  ;;  %v4644_v6 = vld [vmem:[#allocation8 + $0x4] ss:$24 sps:$4 sm:$0xff]   ;;  %v4642_v11 = vld [vmem:[#allocation8] ss:$24 sps:$4 sm:$0xff]   ;;  %s4919_s17 = scalar_lea.vmem %s3928_s1, 12288  ;;  %p4924_p5 = scmp.lt.s32.totalorder %s3928_s1, %s3928_s1 }
  0x63   :  { %1049 = vmatprep.subr.bf16.mxu1 %v4581_v25  ;;  %v4641_v5 = vld [vmem:[#allocation7 + $0x14] ss:$24 sps:$4 sm:$0xff]   ;;  %v83_v8 = vld [vmem:[#allocation2 + $0x38] sm:$0xff]  ;;  %v5078_v9 = vpack.c.bf16 %v78_v4, %v76_v3  ;;  %v4639_v10 = vld [vmem:[#allocation7 + $0x10] ss:$24 sps:$4 sm:$0xff]   ;;  %p4920_p4 = scmp.ne.s32.totalorder %s3928_s1, %s4919_s17  ;;  %p4925_p6 = scmp.lt.s32.totalorder %s4919_s17, %s4919_s17 }
  0x64   :  { %v5080_v12 = vpack.c.bf16 %v83_v8, %v81_v7  ;;  %v80_v13 = vld [vmem:[#allocation2 + $0x20] sm:$0xff]  ;;  %v82_v14 = vld [vmem:[#allocation2 + $0x30] sm:$0xff]  ;;  %v85_v19 = vld [vmem:[#allocation2 + $0x48] sm:$0xff] }
  0x65   :  { %857 = vmatpush1.bf16.msra.mxu0 %v4583_v26  ;;  %v4645_v15 = vld [vmem:[#allocation7 + $0x40] ss:$24 sps:$4 sm:$0xff]   ;;  %v4647_v16 = vld [vmem:[#allocation7 + $0x44] ss:$24 sps:$4 sm:$0xff]   ;;  %v4650_v17 = vld [vmem:[#allocation8 + $0x34] ss:$24 sps:$4 sm:$0xff]   ;;  %v5086_v23 = vpack.c.bf16 %v82_v14, %v80_v13  ;;  %p4926_p7 = por %p4925_p6, %p4924_p5 }
  0x66   :  { %1050 = vmatpush1.bf16.msra.mxu1 %v4584_v27  ;;  %858 = vmatprep.subr.bf16.mxu0 %v4585_v28  ;;  %v4648_v18 = vld [vmem:[#allocation8 + $0x30] ss:$24 sps:$4 sm:$0xff]   ;;  %v87_v20 = vld [vmem:[#allocation2 + $0x58] sm:$0xff]  ;;  %v4653_v21 = vld [vmem:[#allocation7 + $0x74] ss:$24 sps:$4 sm:$0xff]  }
  0x67   :  { %1051 = vmatprep.subr.bf16.mxu1 %v4587_v29  ;;  %v4656_v22 = vld [vmem:[#allocation8 + $0x64] ss:$24 sps:$4 sm:$0xff]   ;;  %v5088_v24 = vpack.c.bf16 %v87_v20, %v85_v19  ;;  %v4651_v25 = vld [vmem:[#allocation7 + $0x70] ss:$24 sps:$4 sm:$0xff]   ;;  %v4654_v26 = vld [vmem:[#allocation8 + $0x60] ss:$24 sps:$4 sm:$0xff]   ;;  %p4927_p8 = pnand %p4926_p7, %p4920_p4 }
  0x68   :  { %v84_v27 = vld [vmem:[#allocation2 + $0x40] sm:$0xff]  ;;  %v4662_v29 = vld [vmem:[#allocation8 + $0x94] ss:$24 sps:$4 sm:$0xff]   ;;  %v95_v46 = vld [vmem:[#allocation2 + $0x98] sm:$0xff] }
  0x69   :  { %859 = vmatpush1.bf16.msra.mxu0 %v4589_v30  ;;  %v4659_v28 = vld [vmem:[#allocation7 + $0xa4] ss:$24 sps:$4 sm:$0xff]   ;;  %v86_v30 = vld [vmem:[#allocation2 + $0x50] sm:$0xff]  ;;  %v4693_v14 = vld [vmem:[#allocation7 + $0x1c0] ss:$24 sps:$4 sm:$0xff]  }
  0x6a   :  { %1052 = vmatpush1.bf16.msra.mxu1 %v4590_v31  ;;  %860 = vmatprep.subr.bf16.mxu0 %v4591_v32  ;;  %v89_v31 = vld [vmem:[#allocation2 + $0x68] sm:$0xff]  ;;  %v91_v32 = vld [vmem:[#allocation2 + $0x78] sm:$0xff] }
  0x6b   :  { %1053 = vmatprep.subr.bf16.mxu1 %v4593_v33  ;;  %v4657_v33 = vld [vmem:[#allocation7 + $0xa0] ss:$24 sps:$4 sm:$0xff]   ;;  %v4677_v49 = vld [vmem:[#allocation7 + $0x134] ss:$24 sps:$4 sm:$0xff]   ;;  %v4687_v4 = vld [vmem:[#allocation7 + $0x190] ss:$24 sps:$4 sm:$0xff]  }
  0x6c   :  { %v4695_v7 = vld [vmem:[#allocation7 + $0x1c4] ss:$24 sps:$4 sm:$0xff]   ;;  %v4698_v8 = vld [vmem:[#allocation8 + $0x1b4] ss:$24 sps:$4 sm:$0xff]   ;;  %v4699_v20 = vld [vmem:[#allocation7 + $0x1f0] ss:$24 sps:$4 sm:$0xff]  }
  0x6d   :  { %861 = vmatpush1.bf16.msra.mxu0 %v4595_v34  ;;  %v4660_v34 = vld [vmem:[#allocation8 + $0x90] ss:$24 sps:$4 sm:$0xff]   ;;  %v103_v13 = vld [vmem:[#allocation2 + $0xd8] sm:$0xff] }
  0x6e   :  { %1054 = vmatpush1.bf16.msra.mxu1 %v4596_v35  ;;  %862 = vmatprep.subr.bf16.mxu0 %v4597_v36  ;;  %v4665_v35 = vld [vmem:[#allocation7 + $0xd4] ss:$24 sps:$4 sm:$0xff]   ;;  %v4668_v36 = vld [vmem:[#allocation8 + $0xc4] ss:$24 sps:$4 sm:$0xff]  }
  0x6f   :  { %1055 = vmatprep.subr.bf16.mxu1 %v4599_v37  ;;  %v5094_v37 = vpack.c.bf16 %v86_v30, %v84_v27  ;;  %v102_v27 = vld [vmem:[#allocation2 + $0xd0] sm:$0xff]  ;;  %v4705_v30 = vld [vmem:[#allocation7 + $0x220] ss:$24 sps:$4 sm:$0xff]  }
  0x71   :  { %863 = vmatpush1.bf16.msra.mxu0 %v4601_v38  ;;  %v5096_v38 = vpack.c.bf16 %v91_v32, %v89_v31  ;;  %v4708_v31 = vld [vmem:[#allocation8 + $0x210] ss:$24 sps:$4 sm:$0xff]   ;;  %v4713_v32 = vld [vmem:[#allocation7 + $0x254] ss:$24 sps:$4 sm:$0xff]  }
  0x72   :  { %1056 = vmatpush1.bf16.msra.mxu1 %v4602_v39  ;;  %864 = vmatprep.subr.bf16.mxu0 %v4603_v40  ;;  %v4663_v39 = vld [vmem:[#allocation7 + $0xd0] ss:$24 sps:$4 sm:$0xff]   ;;  %v4666_v40 = vld [vmem:[#allocation8 + $0xc0] ss:$24 sps:$4 sm:$0xff]  }
  0x73   :  { %1057 = vmatprep.subr.bf16.mxu1 %v4605_v41  ;;  %v88_v41 = vld [vmem:[#allocation2 + $0x60] sm:$0xff] }
  0x75   :  { %865 = vmatpush1.bf16.msra.mxu0 %v4607_v42  ;;  %v4671_v42 = vld [vmem:[#allocation7 + $0x104] ss:$24 sps:$4 sm:$0xff]  }
  0x76   :  { %1058 = vmatpush1.bf16.msra.mxu1 %v4608_v43  ;;  %866 = vmatprep.subr.bf16.mxu0 %v4609_v44  ;;  %v4674_v43 = vld [vmem:[#allocation8 + $0xf4] ss:$24 sps:$4 sm:$0xff]  }
  0x77   :  { %1059 = vmatprep.subr.bf16.mxu1 %v4611_v45  ;;  %v90_v44 = vld [vmem:[#allocation2 + $0x70] sm:$0xff]  ;;  %v93_v45 = vld [vmem:[#allocation2 + $0x88] sm:$0xff] }
  0x79   :  { %867 = vmatpush1.bf16.msra.mxu0 %v4613_v47  ;;  %v4669_v47 = vld [vmem:[#allocation7 + $0x100] ss:$24 sps:$4 sm:$0xff]  }
  0x7a   :  { %1060 = vmatpush1.bf16.msra.mxu1 %v4614_v48  ;;  %868 = vmatprep.subr.bf16.mxu0 %v4615_v50  ;;  %v4672_v48 = vld [vmem:[#allocation8 + $0xf0] ss:$24 sps:$4 sm:$0xff]   ;;  %v4680_v50 = vld [vmem:[#allocation8 + $0x124] ss:$24 sps:$4 sm:$0xff]  }
  0x7b   :  { %1061 = vmatprep.subr.bf16.mxu1 %v4617_v52  ;;  %v5102_v52 = vpack.c.bf16 %v90_v44, %v88_v41  ;;  %v4719_v41 = vld [vmem:[#allocation7 + $0x284] ss:$24 sps:$4 sm:$0xff]   ;;  %v109_v44 = vld [vmem:[#allocation2 + $0x108] sm:$0xff] }
  0x7d   :  { %869 = vmatpush1.bf16.msra.mxu0 %v4619_v53  ;;  %v5104_v53 = vpack.c.bf16 %v95_v46, %v93_v45  ;;  %v111_v45 = vld [vmem:[#allocation2 + $0x118] sm:$0xff] }
  0x7e   :  { %1062 = vmatpush1.bf16.msra.mxu1 %v4620_v54  ;;  %870 = vmatprep.subr.bf16.mxu0 %v4621_v55  ;;  %v4675_v54 = vld [vmem:[#allocation7 + $0x130] ss:$24 sps:$4 sm:$0xff]   ;;  %v4678_v55 = vld [vmem:[#allocation8 + $0x120] ss:$24 sps:$4 sm:$0xff]  }
  0x7f   :  { %1063 = vmatprep.subr.bf16.mxu1 %v4623_v56  ;;  %v92_v56 = vld [vmem:[#allocation2 + $0x80] sm:$0xff] }
  0x80   :  { %v4717_v46 = vld [vmem:[#allocation7 + $0x280] ss:$24 sps:$4 sm:$0xff]  }
  0x81   :  { %871 = vmatpush1.bf16.msra.mxu0 %v4625_v57  ;;  %v4683_v57 = vld [vmem:[#allocation7 + $0x164] ss:$24 sps:$4 sm:$0xff]  }
  0x82   :  { %1064 = vmatpush1.bf16.msra.mxu1 %v4626_v58  ;;  %872 = vmatprep.subr.bf16.mxu0 %v4627_v59  ;;  %v4686_v58 = vld [vmem:[#allocation8 + $0x154] ss:$24 sps:$4 sm:$0xff]  }
  0x83   :  { %1065 = vmatprep.subr.bf16.mxu1 %v4629_v60  ;;  %v94_v59 = vld [vmem:[#allocation2 + $0x90] sm:$0xff]  ;;  %v97_v60 = vld [vmem:[#allocation2 + $0xa8] sm:$0xff] }
  0x85   :  { %873 = vmatpush1.bf16.msra.mxu0 %v4631_v61  ;;  %v99_v61 = vld [vmem:[#allocation2 + $0xb8] sm:$0xff] }
  0x86   :  { %1066 = vmatpush1.bf16.msra.mxu1 %v4632_v62  ;;  %874 = vmatprep.subr.bf16.mxu0 %v4633_v63  ;;  %v4681_v62 = vld [vmem:[#allocation7 + $0x160] ss:$24 sps:$4 sm:$0xff]   ;;  %v4684_v63 = vld [vmem:[#allocation8 + $0x150] ss:$24 sps:$4 sm:$0xff]   ;;  %v5112_v3 = vpack.c.bf16 %v99_v61, %v97_v60 }
  0x87   :  { %1067 = vmatprep.subr.bf16.mxu1 %v4635_v0  ;;  %v4689_v0 = vld [vmem:[#allocation7 + $0x194] ss:$24 sps:$4 sm:$0xff]  }
  0x88   :  { %v110_v60 = vld [vmem:[#allocation2 + $0x110] sm:$0xff]  ;;  %v113_v61 = vld [vmem:[#allocation2 + $0x128] sm:$0xff] }
  0x89   :  { %875 = vmatpush1.bf16.msra.mxu0 %v4637_v1  ;;  %v4692_v1 = vld [vmem:[#allocation8 + $0x184] ss:$24 sps:$4 sm:$0xff]  }
  0x8a   :  { %1068 = vmatpush1.bf16.msra.mxu1 %v4638_v2  ;;  %1230 = vmatprep.subr.bf16.mxu0 %v4641_v5  ;;  %v5110_v2 = vpack.c.bf16 %v94_v59, %v92_v56  ;;  %v4690_v5 = vld [vmem:[#allocation8 + $0x180] ss:$24 sps:$4 sm:$0xff]   ;;  %v4734_v59 = vld [vmem:[#allocation8 + $0x2d4] ss:$24 sps:$4 sm:$0xff]  }
  0x8b   :  { %2671 = vmatprep.subr.bf16.mxu1 %v4644_v6  ;;  %v96_v6 = vld [vmem:[#allocation2 + $0xa0] sm:$0xff] }
  0x8c   :  { %877 = vmatmul.mubr.bf16.vlgmr.msra.gmra.mrb[0].mxu0 %v5078_v9  ;;  %v4726_v56 = vld [vmem:[#allocation8 + $0x2a0] ss:$24 sps:$4 sm:$0xff]  }
  0x8d   :  { %1070 = vmatmul.mubr.bf16.vlgmr.msra.gmra.mrb[0].mxu1 %v5078_v9  ;;  %1231 = vmatpush1.bf16.msra.mxu0 %v4639_v10  ;;  %v98_v10 = vld [vmem:[#allocation2 + $0xb0] sm:$0xff] }
  0x8e   :  { %2672 = vmatpush1.bf16.msra.mxu1 %v4642_v11  ;;  %886 = vmatprep.mubr.bf16.mxu0 %v5080_v12  ;;  %v101_v11 = vld [vmem:[#allocation2 + $0xc8] sm:$0xff] }
  0x8f   :  { %1079 = vmatprep.mubr.bf16.mxu1 %v5080_v12  ;;  %1232 = vmatprep.subr.bf16.mxu0 %v4647_v16  ;;  %v4701_v16 = vld [vmem:[#allocation7 + $0x1f4] ss:$24 sps:$4 sm:$0xff]   ;;  %v5120_v19 = vpack.c.bf16 %v103_v13, %v101_v11  ;;  %v119_v11 = vld [vmem:[#allocation2 + $0x158] sm:$0xff] }
  0x90   :  { %2673 = vmatprep.subr.bf16.mxu1 %v4650_v17  ;;  %v4704_v17 = vld [vmem:[#allocation8 + $0x1e4] ss:$24 sps:$4 sm:$0xff]  }
  0x91   :  { %1233 = vmatpush1.bf16.msra.mxu0 %v4645_v15  ;;  %v4696_v15 = vld [vmem:[#allocation8 + $0x1b0] ss:$24 sps:$4 sm:$0xff]  }
  0x92   :  { %2674 = vmatpush1.bf16.msra.mxu1 %v4648_v18  ;;  %1234 = vmatprep.subr.bf16.mxu0 %v4653_v21  ;;  %v5118_v18 = vpack.c.bf16 %v98_v10, %v96_v6  ;;  %v4702_v21 = vld [vmem:[#allocation8 + $0x1e0] ss:$24 sps:$4 sm:$0xff]   ;;  %v117_v10 = vld [vmem:[#allocation2 + $0x148] sm:$0xff] }
  0x93   :  { %2675 = vmatprep.subr.bf16.mxu1 %v4656_v22  ;;  %v100_v22 = vld [vmem:[#allocation2 + $0xc0] sm:$0xff] }
  0x94   :  { %887 = vmatmul.mubr.bf16.gmra.mrb[4].mxu0 %v5086_v23 }
  0x95   :  { %1080 = vmatmul.mubr.bf16.gmra.mrb[4].mxu1 %v5086_v23  ;;  %896 = vmatprep.mubr.bf16.mxu0 %v5088_v24 }
  0x96   :  { %1089 = vmatprep.mubr.bf16.mxu1 %v5088_v24  ;;  %1235 = vmatpush1.bf16.msra.mxu0 %v4651_v25  ;;  %v4707_v25 = vld [vmem:[#allocation7 + $0x224] ss:$24 sps:$4 sm:$0xff]  }
  0x97   :  { %2676 = vmatpush1.bf16.msra.mxu1 %v4654_v26  ;;  %1236 = vmatprep.subr.bf16.mxu0 %v4659_v28  ;;  %v4710_v26 = vld [vmem:[#allocation8 + $0x214] ss:$24 sps:$4 sm:$0xff]  }
  0x98   :  { %2677 = vmatprep.subr.bf16.mxu1 %v4662_v29  ;;  %v105_v28 = vld [vmem:[#allocation2 + $0xe8] sm:$0xff]  ;;  %v107_v29 = vld [vmem:[#allocation2 + $0xf8] sm:$0xff] }
  0x9a   :  { %1237 = vmatpush1.bf16.msra.mxu0 %v4657_v33  ;;  %v4716_v33 = vld [vmem:[#allocation8 + $0x244] ss:$24 sps:$4 sm:$0xff]  }
  0x9b   :  { %2678 = vmatpush1.bf16.msra.mxu1 %v4660_v34  ;;  %1238 = vmatprep.subr.bf16.mxu0 %v4665_v35  ;;  %v5126_v34 = vpack.c.bf16 %v102_v27, %v100_v22  ;;  %v5128_v35 = vpack.c.bf16 %v107_v29, %v105_v28  ;;  %v125_v27 = vld [vmem:[#allocation2 + $0x188] sm:$0xff]  ;;  %v127_v28 = vld [vmem:[#allocation2 + $0x198] sm:$0xff] }
  0x9c   :  { %2679 = vmatprep.subr.bf16.mxu1 %v4668_v36  ;;  %897 = vmatmul.mubr.bf16.gmra.mrb[8].mxu0 %v5094_v37  ;;  %v4711_v36 = vld [vmem:[#allocation7 + $0x250] ss:$24 sps:$4 sm:$0xff]  }
  0x9d   :  { %1090 = vmatmul.mubr.bf16.gmra.mrb[8].mxu1 %v5094_v37  ;;  %906 = vmatprep.mubr.bf16.mxu0 %v5096_v38 }
  0x9e   :  { %1099 = vmatprep.mubr.bf16.mxu1 %v5096_v38  ;;  %1239 = vmatpush1.bf16.msra.mxu0 %v4663_v39  ;;  %v4714_v39 = vld [vmem:[#allocation8 + $0x240] ss:$24 sps:$4 sm:$0xff]  }
  0x9f   :  { %2680 = vmatpush1.bf16.msra.mxu1 %v4666_v40  ;;  %1240 = vmatprep.subr.bf16.mxu0 %v4671_v42  ;;  %v104_v40 = vld [vmem:[#allocation2 + $0xe0] sm:$0xff]  ;;  %v4722_v42 = vld [vmem:[#allocation8 + $0x274] ss:$24 sps:$4 sm:$0xff]  }
  0xa0   :  { %2681 = vmatprep.subr.bf16.mxu1 %v4674_v43  ;;  %v106_v43 = vld [vmem:[#allocation2 + $0xf0] sm:$0xff] }
  0xa2   :  { %1241 = vmatpush1.bf16.msra.mxu0 %v4669_v47  ;;  %v4720_v47 = vld [vmem:[#allocation8 + $0x270] ss:$24 sps:$4 sm:$0xff]  }
  0xa3   :  { %2682 = vmatpush1.bf16.msra.mxu1 %v4672_v48  ;;  %1242 = vmatprep.subr.bf16.mxu0 %v4677_v49  ;;  %v4725_v48 = vld [vmem:[#allocation7 + $0x2b4] ss:$24 sps:$4 sm:$0xff]   ;;  %v4728_v49 = vld [vmem:[#allocation8 + $0x2a4] ss:$24 sps:$4 sm:$0xff]  }
  0xa4   :  { %2683 = vmatprep.subr.bf16.mxu1 %v4680_v50  ;;  %907 = vmatmul.mubr.bf16.gmra.mrb[12].mxu0 %v5102_v52  ;;  %v5134_v50 = vpack.c.bf16 %v106_v43, %v104_v40  ;;  %v133_v43 = vld [vmem:[#allocation2 + $0x1c8] sm:$0xff] }
  0xa5   :  { %1100 = vmatmul.mubr.bf16.gmra.mrb[12].mxu1 %v5102_v52  ;;  %916 = vmatprep.mubr.bf16.mxu0 %v5104_v53 }
  0xa6   :  { %1109 = vmatprep.mubr.bf16.mxu1 %v5104_v53  ;;  %1243 = vmatpush1.bf16.msra.mxu0 %v4675_v54  ;;  %v5136_v54 = vpack.c.bf16 %v111_v45, %v109_v44  ;;  %v135_v44 = vld [vmem:[#allocation2 + $0x1d8] sm:$0xff] }
  0xa7   :  { %2684 = vmatpush1.bf16.msra.mxu1 %v4678_v55  ;;  %1244 = vmatprep.subr.bf16.mxu0 %v4683_v57  ;;  %v4723_v55 = vld [vmem:[#allocation7 + $0x2b0] ss:$24 sps:$4 sm:$0xff]   ;;  %v108_v57 = vld [vmem:[#allocation2 + $0x100] sm:$0xff] }
  0xa8   :  { %2685 = vmatprep.subr.bf16.mxu1 %v4686_v58  ;;  %v4731_v58 = vld [vmem:[#allocation7 + $0x2e4] ss:$24 sps:$4 sm:$0xff]  }
  0xaa   :  { %1245 = vmatpush1.bf16.msra.mxu0 %v4681_v62  ;;  %v115_v62 = vld [vmem:[#allocation2 + $0x138] sm:$0xff] }
  0xab   :  { %2686 = vmatpush1.bf16.msra.mxu1 %v4684_v63  ;;  %1246 = vmatprep.subr.bf16.mxu0 %v4689_v0  ;;  %v4729_v63 = vld [vmem:[#allocation7 + $0x2e0] ss:$24 sps:$4 sm:$0xff]   ;;  %v4732_v0 = vld [vmem:[#allocation8 + $0x2d0] ss:$24 sps:$4 sm:$0xff]   ;;  %v5144_v6 = vpack.c.bf16 %v115_v62, %v113_v61 }
  0xac   :  { %2687 = vmatprep.subr.bf16.mxu1 %v4692_v1  ;;  %917 = vmatmul.mubr.bf16.gmra.mrb[16].mxu0 %v5110_v2  ;;  %v4737_v1 = vld [vmem:[#allocation8 + $0xc] ss:$24 sps:$4 sm:$0xff]   ;;  %v175_v61 = vld [vmem:[#allocation5 + $0x18] sm:$0xff] }
  0xad   :  { %1110 = vmatmul.mubr.bf16.gmra.mrb[16].mxu1 %v5110_v2  ;;  %926 = vmatprep.mubr.bf16.mxu0 %v5112_v3 }
  0xae   :  { %1119 = vmatprep.mubr.bf16.mxu1 %v5112_v3  ;;  %1247 = vmatpush1.bf16.msra.mxu0 %v4687_v4  ;;  %v4740_v4 = vld [vmem:[#allocation8 + $0x14] ss:$24 sps:$4 sm:$0xff]  }
  0xaf   :  { %2688 = vmatpush1.bf16.msra.mxu1 %v4690_v5  ;;  %1248 = vmatprep.subr.bf16.mxu0 %v4695_v7  ;;  %v5142_v5 = vpack.c.bf16 %v110_v60, %v108_v57  ;;  %v112_v7 = vld [vmem:[#allocation2 + $0x120] sm:$0xff]  ;;  %v173_v60 = vld [vmem:[#allocation5 + $0x8] sm:$0xff] }
  0xb0   :  { %2689 = vmatprep.subr.bf16.mxu1 %v4698_v8  ;;  %v114_v8 = vld [vmem:[#allocation2 + $0x130] sm:$0xff] }
  0xb1   :  { %v5150_v13 = vpack.c.bf16 %v114_v8, %v112_v7  ;;  %v179_v7 = vld [vmem:[#allocation5 + $0x38] sm:$0xff] }
  0xb2   :  { %1249 = vmatpush1.bf16.msra.mxu0 %v4693_v14  ;;  %v5152_v14 = vpack.c.bf16 %v119_v11, %v117_v10  ;;  %v4735_v10 = vld [vmem:[#allocation8 + $0x8] ss:$24 sps:$4 sm:$0xff]  }
  0xb3   :  { %2690 = vmatpush1.bf16.msra.mxu1 %v4696_v15  ;;  %1250 = vmatprep.subr.bf16.mxu0 %v4701_v16  ;;  %v116_v15 = vld [vmem:[#allocation2 + $0x140] sm:$0xff]  ;;  %v118_v16 = vld [vmem:[#allocation2 + $0x150] sm:$0xff] }
  0xb4   :  { %2691 = vmatprep.subr.bf16.mxu1 %v4704_v17  ;;  %927 = vmatmul.mubr.bf16.gmra.mrb[20].mxu0 %v5118_v18  ;;  %v121_v17 = vld [vmem:[#allocation2 + $0x168] sm:$0xff] }
  0xb5   :  { %1120 = vmatmul.mubr.bf16.gmra.mrb[20].mxu1 %v5118_v18  ;;  %936 = vmatprep.mubr.bf16.mxu0 %v5120_v19  ;;  %v4738_v11 = vld [vmem:[#allocation8 + $0x10] ss:$24 sps:$4 sm:$0xff]  }
  0xb6   :  { %1129 = vmatprep.mubr.bf16.mxu1 %v5120_v19  ;;  %1251 = vmatpush1.bf16.msra.mxu0 %v4699_v20  ;;  %v123_v20 = vld [vmem:[#allocation2 + $0x178] sm:$0xff] }
  0xb7   :  { %2692 = vmatpush1.bf16.msra.mxu1 %v4702_v21  ;;  %1252 = vmatprep.subr.bf16.mxu0 %v4707_v25  ;;  %v5158_v21 = vpack.c.bf16 %v118_v16, %v116_v15  ;;  %v5160_v22 = vpack.c.bf16 %v123_v20, %v121_v17  ;;  %v120_v25 = vld [vmem:[#allocation2 + $0x160] sm:$0xff]  ;;  %v4743_v16 = vld [vmem:[#allocation8 + $0x3c] ss:$24 sps:$4 sm:$0xff]  }
  0xb8   :  { %2693 = vmatprep.subr.bf16.mxu1 %v4710_v26  ;;  %v122_v26 = vld [vmem:[#allocation2 + $0x170] sm:$0xff]  ;;  %v4746_v17 = vld [vmem:[#allocation8 + $0x44] ss:$24 sps:$4 sm:$0xff]  }
  0xb9   :  { %v5166_v29 = vpack.c.bf16 %v122_v26, %v120_v25  ;;  %v176_v20 = vld [vmem:[#allocation5 + $0x20] sm:$0xff]  ;;  %v4741_v25 = vld [vmem:[#allocation8 + $0x38] ss:$24 sps:$4 sm:$0xff]  }
  0xba   :  { %1253 = vmatpush1.bf16.msra.mxu0 %v4705_v30  ;;  %v5168_v30 = vpack.c.bf16 %v127_v28, %v125_v27  ;;  %v4744_v26 = vld [vmem:[#allocation8 + $0x40] ss:$24 sps:$4 sm:$0xff]   ;;  %v181_v27 = vld [vmem:[#allocation5 + $0x48] sm:$0xff] }
  0xbb   :  { %2694 = vmatpush1.bf16.msra.mxu1 %v4708_v31  ;;  %1254 = vmatprep.subr.bf16.mxu0 %v4713_v32  ;;  %v124_v31 = vld [vmem:[#allocation2 + $0x180] sm:$0xff]  ;;  %v126_v32 = vld [vmem:[#allocation2 + $0x190] sm:$0xff]  ;;  %v183_v28 = vld [vmem:[#allocation5 + $0x58] sm:$0xff] }
  0xbc   :  { %2695 = vmatprep.subr.bf16.mxu1 %v4716_v33  ;;  %937 = vmatmul.mubr.bf16.gmra.mrb[24].mxu0 %v5126_v34  ;;  %v129_v33 = vld [vmem:[#allocation2 + $0x1a8] sm:$0xff] }
  0xbd   :  { %1130 = vmatmul.mubr.bf16.gmra.mrb[24].mxu1 %v5126_v34  ;;  %946 = vmatprep.mubr.bf16.mxu0 %v5128_v35 }
  0xbe   :  { %1139 = vmatprep.mubr.bf16.mxu1 %v5128_v35  ;;  %1255 = vmatpush1.bf16.msra.mxu0 %v4711_v36  ;;  %v131_v36 = vld [vmem:[#allocation2 + $0x1b8] sm:$0xff] }
  0xbf   :  { %2696 = vmatpush1.bf16.msra.mxu1 %v4714_v39  ;;  %1256 = vmatprep.subr.bf16.mxu0 %v4719_v41  ;;  %v5174_v39 = vpack.c.bf16 %v126_v32, %v124_v31  ;;  %v5176_v40 = vpack.c.bf16 %v131_v36, %v129_v33  ;;  %v128_v41 = vld [vmem:[#allocation2 + $0x1a0] sm:$0xff]  ;;  %v4752_v32 = vld [vmem:[#allocation8 + $0x74] ss:$24 sps:$4 sm:$0xff]  }
  0xc0   :  { %2697 = vmatprep.subr.bf16.mxu1 %v4722_v42  ;;  %v130_v42 = vld [vmem:[#allocation2 + $0x1b0] sm:$0xff]  ;;  %v4749_v31 = vld [vmem:[#allocation8 + $0x6c] ss:$24 sps:$4 sm:$0xff]   ;;  %v4747_v36 = vld [vmem:[#allocation8 + $0x68] ss:$24 sps:$4 sm:$0xff]  }
  0xc1   :  { %v5182_v45 = vpack.c.bf16 %v130_v42, %v128_v41  ;;  %v4750_v41 = vld [vmem:[#allocation8 + $0x70] ss:$24 sps:$4 sm:$0xff]   ;;  %v4755_v42 = vld [vmem:[#allocation8 + $0x9c] ss:$24 sps:$4 sm:$0xff]  }
  0xc2   :  { %1257 = vmatpush1.bf16.msra.mxu0 %v4717_v46  ;;  %v5184_v46 = vpack.c.bf16 %v135_v44, %v133_v43  ;;  %v4758_v43 = vld [vmem:[#allocation8 + $0xa4] ss:$24 sps:$4 sm:$0xff]   ;;  %v182_v44 = vld [vmem:[#allocation5 + $0x50] sm:$0xff] }
  0xc3   :  { %2698 = vmatpush1.bf16.msra.mxu1 %v4720_v47  ;;  %1258 = vmatprep.subr.bf16.mxu0 %v4725_v48  ;;  %v132_v47 = vld [vmem:[#allocation2 + $0x1c0] sm:$0xff]  ;;  %v134_v48 = vld [vmem:[#allocation2 + $0x1d0] sm:$0xff] }
  0xc4   :  { %2699 = vmatprep.subr.bf16.mxu1 %v4728_v49  ;;  %947 = vmatmul.mubr.bf16.gmra.mrb[28].mxu0 %v5134_v50  ;;  %v137_v49 = vld [vmem:[#allocation2 + $0x1e8] sm:$0xff] }
  0xc5   :  { %1140 = vmatmul.mubr.bf16.gmra.mrb[28].mxu1 %v5134_v50  ;;  %956 = vmatprep.mubr.bf16.mxu0 %v5136_v54 }
  0xc6   :  { %1149 = vmatprep.mubr.bf16.mxu1 %v5136_v54  ;;  %1259 = vmatpush1.bf16.msra.mxu0 %v4723_v55  ;;  %v139_v55 = vld [vmem:[#allocation2 + $0x1f8] sm:$0xff] }
  0xc7   :  { %2700 = vmatpush1.bf16.msra.mxu1 %v4726_v56  ;;  %1260 = vmatprep.subr.bf16.mxu0 %v4731_v58  ;;  %v5190_v56 = vpack.c.bf16 %v134_v48, %v132_v47  ;;  %v5192_v57 = vpack.c.bf16 %v139_v55, %v137_v49  ;;  %v136_v58 = vld [vmem:[#allocation2 + $0x1e0] sm:$0xff]  ;;  %v185_v47 = vld [vmem:[#allocation5 + $0x68] sm:$0xff]  ;;  %v187_v48 = vld [vmem:[#allocation5 + $0x78] sm:$0xff] }
  0xc8   :  { %2701 = vmatprep.subr.bf16.mxu1 %v4734_v59  ;;  %v138_v59 = vld [vmem:[#allocation2 + $0x1f0] sm:$0xff]  ;;  %v4756_v55 = vld [vmem:[#allocation8 + $0xa0] ss:$24 sps:$4 sm:$0xff]  }
  0xc9   :  { %v5198_v62 = vpack.c.bf16 %v138_v59, %v136_v58  ;;  %v4753_v49 = vld [vmem:[#allocation8 + $0x98] ss:$24 sps:$4 sm:$0xff]   ;;  %v4761_v58 = vld [vmem:[#allocation8 + $0xcc] ss:$24 sps:$4 sm:$0xff]  }
  0xca   :  { %1261 = vmatpush1.bf16.msra.mxu0 %v4729_v63  ;;  %v5200_v63 = vpack.c.bf16 %v175_v61, %v173_v60  ;;  %v4764_v59 = vld [vmem:[#allocation8 + $0xd4] ss:$24 sps:$4 sm:$0xff]   ;;  %v4762_v61 = vld [vmem:[#allocation8 + $0xd0] ss:$24 sps:$4 sm:$0xff]  }
  0xcb   :  { %2702 = vmatpush1.bf16.msra.mxu1 %v4732_v0  ;;  %2864 = vmatprep.subr.bf16.mxu0 %v4737_v1  ;;  %v172_v0 = vld [vmem:[#allocation5] sm:$0xff]  ;;  %v174_v1 = vld [vmem:[#allocation5 + $0x10] sm:$0xff] }
  0xcc   :  { %3057 = vmatprep.subr.bf16.mxu1 %v4740_v4  ;;  %957 = vmatmul.mubr.bf16.gmra.mrb[32].mxu0 %v5142_v5  ;;  %v177_v4 = vld [vmem:[#allocation5 + $0x28] sm:$0xff]  ;;  %v5206_v8 = vpack.c.bf16 %v174_v1, %v172_v0  ;;  %v4767_v0 = vld [vmem:[#allocation8 + $0xfc] ss:$24 sps:$4 sm:$0xff]  }
  0xcd   :  { %1150 = vmatmul.mubr.bf16.gmra.mrb[32].mxu1 %v5142_v5  ;;  %966 = vmatprep.mubr.bf16.mxu0 %v5144_v6  ;;  %v5208_v15 = vpack.c.bf16 %v179_v7, %v177_v4  ;;  %v4770_v1 = vld [vmem:[#allocation8 + $0x104] ss:$24 sps:$4 sm:$0xff]   ;;  %v186_v7 = vld [vmem:[#allocation5 + $0x70] sm:$0xff] }
  0xce   :  { %1159 = vmatprep.mubr.bf16.mxu1 %v5144_v6  ;;  %v184_v4 = vld [vmem:[#allocation5 + $0x60] sm:$0xff] }
  0xd4   :  { %967 = vmatmul.mubr.bf16.gmra.mrb[36].mxu0 %v5150_v13 }
  0xd5   :  { %1160 = vmatmul.mubr.bf16.gmra.mrb[36].mxu1 %v5150_v13  ;;  %976 = vmatprep.mubr.bf16.mxu0 %v5152_v14 }
  0xd6   :  { %1169 = vmatprep.mubr.bf16.mxu1 %v5152_v14 }
  0xdc   :  { %977 = vmatmul.mubr.bf16.gmra.mrb[40].mxu0 %v5158_v21 }
  0xdd   :  { %1170 = vmatmul.mubr.bf16.gmra.mrb[40].mxu1 %v5158_v21  ;;  %986 = vmatprep.mubr.bf16.mxu0 %v5160_v22 }
  0xde   :  { %1179 = vmatprep.mubr.bf16.mxu1 %v5160_v22 }
  0xe4   :  { %987 = vmatmul.mubr.bf16.gmra.mrb[44].mxu0 %v5166_v29 }
  0xe5   :  { %1180 = vmatmul.mubr.bf16.gmra.mrb[44].mxu1 %v5166_v29  ;;  %996 = vmatprep.mubr.bf16.mxu0 %v5168_v30 }
  0xe6   :  { %1189 = vmatprep.mubr.bf16.mxu1 %v5168_v30 }
  0xec   :  { %997 = vmatmul.mubr.bf16.gmra.mrb[48].mxu0 %v5174_v39 }
  0xed   :  { %1190 = vmatmul.mubr.bf16.gmra.mrb[48].mxu1 %v5174_v39  ;;  %1006 = vmatprep.mubr.bf16.mxu0 %v5176_v40 }
  0xee   :  { %1199 = vmatprep.mubr.bf16.mxu1 %v5176_v40 }
  0xf4   :  { %1007 = vmatmul.mubr.bf16.gmra.mrb[52].mxu0 %v5182_v45 }
  0xf5   :  { %1200 = vmatmul.mubr.bf16.gmra.mrb[52].mxu1 %v5182_v45  ;;  %1016 = vmatprep.mubr.bf16.mxu0 %v5184_v46 }
  0xf6   :  { %1209 = vmatprep.mubr.bf16.mxu1 %v5184_v46 }
  0xfc   :  { %1017 = vmatmul.mubr.bf16.gmra.mrb[56].mxu0 %v5190_v56 }
  0xfd   :  { %1210 = vmatmul.mubr.bf16.gmra.mrb[56].mxu1 %v5190_v56  ;;  %1026 = vmatprep.mubr.bf16.mxu0 %v5192_v57 }
  0xfe   :  { %1219 = vmatprep.mubr.bf16.mxu1 %v5192_v57 }
 0x104   :  { %1027 = vmatmul.mubr.bf16.gmra.mrb[60].mxu0 %v5198_v62 }
 0x105   :  { %1220 = vmatmul.mubr.bf16.gmra.mrb[60].mxu1 %v5198_v62  ;;  %1262 = vmatprep.mubr.bf16.mxu0 %v5074_v51  ;;  %v178_v51 = vld [vmem:[#allocation5 + $0x30] sm:$0xff] }
 0x106   :  { %2703 = vmatprep.mubr.bf16.mxu1 %v5200_v63  ;;  %v5214_v33 = vpack.c.bf16 %v178_v51, %v176_v20  ;;  %v4773_v20 = vld [vmem:[#allocation8 + $0x12c] ss:$24 sps:$4 sm:$0xff]  }
 0x107   :  { %v4776_v51 = vld [vmem:[#allocation8 + $0x134] ss:$24 sps:$4 sm:$0xff]  }
 0x10c   :  { %1263 = vmatmul.mubr.bf16.vlgmr.msra.gmra.mrb[64].mxu0 %v5078_v9  ;;  %v5216_v9 = vpack.c.bf16 %v183_v28, %v181_v27  ;;  %v4779_v27 = vld [vmem:[#allocation8 + $0x15c] ss:$24 sps:$4 sm:$0xff]  }
 0x10d   :  { %2704 = vmatmul.mubr.bf16.vlgmr.msra.gmra.mrb[64].mxu1 %v5206_v8  ;;  %2865 = vmatpush1.bf16.msra.mxu0 %v4735_v10  ;;  %v189_v10 = vld [vmem:[#allocation5 + $0x88] sm:$0xff]  ;;  %v4782_v28 = vld [vmem:[#allocation8 + $0x164] ss:$24 sps:$4 sm:$0xff]  }
 0x10e   :  { %3058 = vmatpush1.bf16.msra.mxu1 %v4738_v11  ;;  %1272 = vmatprep.mubr.bf16.mxu0 %v5080_v12  ;;  %v180_v12 = vld [vmem:[#allocation5 + $0x40] sm:$0xff]  ;;  %v191_v11 = vld [vmem:[#allocation5 + $0x98] sm:$0xff] }
 0x10f   :  { %2713 = vmatprep.mubr.bf16.mxu1 %v5208_v15  ;;  %2866 = vmatprep.subr.bf16.mxu0 %v4743_v16  ;;  %v5222_v60 = vpack.c.bf16 %v182_v44, %v180_v12  ;;  %v4765_v16 = vld [vmem:[#allocation8 + $0xf8] ss:$24 sps:$4 sm:$0xff]   ;;  %v4785_v12 = vld [vmem:[#allocation8 + $0x18c] ss:$24 sps:$4 sm:$0xff]  }
 0x110   :  { %3059 = vmatprep.subr.bf16.mxu1 %v4746_v17  ;;  %v4768_v17 = vld [vmem:[#allocation8 + $0x100] ss:$24 sps:$4 sm:$0xff]   ;;  %v4788_v44 = vld [vmem:[#allocation8 + $0x194] ss:$24 sps:$4 sm:$0xff]  }
 0x111   :  { %2867 = vmatpush1.bf16.msra.mxu0 %v4741_v25  ;;  %v5230_v25 = vpack.c.bf16 %v186_v7, %v184_v4  ;;  %v4797_v4 = vld [vmem:[#allocation8 + $0x1ec] ss:$24 sps:$4 sm:$0xff]  }
 0x112   :  { %3060 = vmatpush1.bf16.msra.mxu1 %v4744_v26  ;;  %2868 = vmatprep.subr.bf16.mxu0 %v4749_v31  ;;  %v4774_v26 = vld [vmem:[#allocation8 + $0x130] ss:$24 sps:$4 sm:$0xff]   ;;  %v188_v31 = vld [vmem:[#allocation5 + $0x80] sm:$0xff]  ;;  %v4800_v7 = vld [vmem:[#allocation8 + $0x1f4] ss:$24 sps:$4 sm:$0xff]  }
 0x113   :  { %3061 = vmatprep.subr.bf16.mxu1 %v4752_v32  ;;  %v190_v32 = vld [vmem:[#allocation5 + $0x90] sm:$0xff] }
 0x114   :  { %1273 = vmatmul.mubr.bf16.gmra.mrb[68].mxu0 %v5086_v23  ;;  %v5224_v23 = vpack.c.bf16 %v187_v48, %v185_v47  ;;  %v5238_v47 = vpack.c.bf16 %v190_v32, %v188_v31  ;;  %v4786_v48 = vld [vmem:[#allocation8 + $0x190] ss:$24 sps:$4 sm:$0xff]   ;;  %v4809_v31 = vld [vmem:[#allocation8 + $0x24c] ss:$24 sps:$4 sm:$0xff]  }
 0x115   :  { %2714 = vmatmul.mubr.bf16.gmra.mrb[68].mxu1 %v5214_v33  ;;  %1282 = vmatprep.mubr.bf16.mxu0 %v5088_v24  ;;  %v4759_v24 = vld [vmem:[#allocation8 + $0xc8] ss:$24 sps:$4 sm:$0xff]   ;;  %v4812_v32 = vld [vmem:[#allocation8 + $0x254] ss:$24 sps:$4 sm:$0xff]  }
 0x116   :  { %2723 = vmatprep.mubr.bf16.mxu1 %v5216_v9  ;;  %2869 = vmatpush1.bf16.msra.mxu0 %v4747_v36  ;;  %v193_v36 = vld [vmem:[#allocation5 + $0xa8] sm:$0xff] }
 0x117   :  { %3062 = vmatpush1.bf16.msra.mxu1 %v4750_v41  ;;  %2870 = vmatprep.subr.bf16.mxu0 %v4755_v42  ;;  %v195_v41 = vld [vmem:[#allocation5 + $0xb8] sm:$0xff] }
 0x118   :  { %3063 = vmatprep.subr.bf16.mxu1 %v4758_v43  ;;  %v4777_v42 = vld [vmem:[#allocation8 + $0x158] ss:$24 sps:$4 sm:$0xff]  }
 0x119   :  { %v4780_v43 = vld [vmem:[#allocation8 + $0x160] ss:$24 sps:$4 sm:$0xff]  }
 0x11a   :  { %2871 = vmatpush1.bf16.msra.mxu0 %v4753_v49  ;;  %v4791_v49 = vld [vmem:[#allocation8 + $0x1bc] ss:$24 sps:$4 sm:$0xff]  }
 0x11b   :  { %3064 = vmatpush1.bf16.msra.mxu1 %v4756_v55  ;;  %2872 = vmatprep.subr.bf16.mxu0 %v4761_v58  ;;  %v4794_v55 = vld [vmem:[#allocation8 + $0x1c4] ss:$24 sps:$4 sm:$0xff]  }
 0x11c   :  { %3065 = vmatprep.subr.bf16.mxu1 %v4764_v59  ;;  %1283 = vmatmul.mubr.bf16.gmra.mrb[72].mxu0 %v5094_v37  ;;  %v5232_v37 = vpack.c.bf16 %v191_v11, %v189_v10  ;;  %v192_v58 = vld [vmem:[#allocation5 + $0xa0] sm:$0xff]  ;;  %v194_v59 = vld [vmem:[#allocation5 + $0xb0] sm:$0xff] }
 0x11d   :  { %2724 = vmatmul.mubr.bf16.gmra.mrb[72].mxu1 %v5222_v60  ;;  %1292 = vmatprep.mubr.bf16.mxu0 %v5096_v38  ;;  %v4771_v38 = vld [vmem:[#allocation8 + $0x128] ss:$24 sps:$4 sm:$0xff]   ;;  %v5246_v10 = vpack.c.bf16 %v194_v59, %v192_v58  ;;  %v4821_v58 = vld [vmem:[#allocation8 + $0x2ac] ss:$24 sps:$4 sm:$0xff]  }
 0x11e   :  { %2733 = vmatprep.mubr.bf16.mxu1 %v5224_v23  ;;  %2873 = vmatpush1.bf16.msra.mxu0 %v4759_v24  ;;  %v197_v24 = vld [vmem:[#allocation5 + $0xc8] sm:$0xff] }
 0x11f   :  { %3066 = vmatpush1.bf16.msra.mxu1 %v4762_v61  ;;  %2874 = vmatprep.subr.bf16.mxu0 %v4767_v0  ;;  %v199_v61 = vld [vmem:[#allocation5 + $0xd8] sm:$0xff]  ;;  %v4798_v11 = vld [vmem:[#allocation8 + $0x1f0] ss:$24 sps:$4 sm:$0xff]   ;;  %v4824_v59 = vld [vmem:[#allocation8 + $0x2b4] ss:$24 sps:$4 sm:$0xff]  }
 0x120   :  { %3067 = vmatprep.subr.bf16.mxu1 %v4770_v1  ;;  %v4789_v0 = vld [vmem:[#allocation8 + $0x1b8] ss:$24 sps:$4 sm:$0xff]  }
 0x121   :  { %v4792_v1 = vld [vmem:[#allocation8 + $0x1c0] ss:$24 sps:$4 sm:$0xff]  }
 0x122   :  { %2875 = vmatpush1.bf16.msra.mxu0 %v4765_v16  ;;  %v4803_v16 = vld [vmem:[#allocation8 + $0x21c] ss:$24 sps:$4 sm:$0xff]  }
 0x123   :  { %3068 = vmatpush1.bf16.msra.mxu1 %v4768_v17  ;;  %2876 = vmatprep.subr.bf16.mxu0 %v4773_v20  ;;  %v4806_v17 = vld [vmem:[#allocation8 + $0x224] ss:$24 sps:$4 sm:$0xff]  }
 0x124   :  { %3069 = vmatprep.subr.bf16.mxu1 %v4776_v51  ;;  %1293 = vmatmul.mubr.bf16.gmra.mrb[76].mxu0 %v5102_v52  ;;  %v5240_v52 = vpack.c.bf16 %v195_v41, %v193_v36  ;;  %v196_v20 = vld [vmem:[#allocation5 + $0xc0] sm:$0xff]  ;;  %v198_v51 = vld [vmem:[#allocation5 + $0xd0] sm:$0xff] }
 0x125   :  { %2734 = vmatmul.mubr.bf16.gmra.mrb[76].mxu1 %v5230_v25  ;;  %1302 = vmatprep.mubr.bf16.mxu0 %v5104_v53  ;;  %v4783_v53 = vld [vmem:[#allocation8 + $0x188] ss:$24 sps:$4 sm:$0xff]   ;;  %v5254_v36 = vpack.c.bf16 %v198_v51, %v196_v20 }
 0x126   :  { %2743 = vmatprep.mubr.bf16.mxu1 %v5232_v37  ;;  %2877 = vmatpush1.bf16.msra.mxu0 %v4771_v38  ;;  %v201_v38 = vld [vmem:[#allocation5 + $0xe8] sm:$0xff] }
 0x127   :  { %3070 = vmatpush1.bf16.msra.mxu1 %v4774_v26  ;;  %2878 = vmatprep.subr.bf16.mxu0 %v4779_v27  ;;  %v203_v26 = vld [vmem:[#allocation5 + $0xf8] sm:$0xff]  ;;  %v4810_v41 = vld [vmem:[#allocation8 + $0x250] ss:$24 sps:$4 sm:$0xff]  }
 0x128   :  { %3071 = vmatprep.subr.bf16.mxu1 %v4782_v28  ;;  %v4801_v27 = vld [vmem:[#allocation8 + $0x218] ss:$24 sps:$4 sm:$0xff]  }
 0x129   :  { %v4804_v28 = vld [vmem:[#allocation8 + $0x220] ss:$24 sps:$4 sm:$0xff]  }
 0x12a   :  { %2879 = vmatpush1.bf16.msra.mxu0 %v4777_v42  ;;  %v4815_v42 = vld [vmem:[#allocation8 + $0x27c] ss:$24 sps:$4 sm:$0xff]  }
 0x12b   :  { %3072 = vmatpush1.bf16.msra.mxu1 %v4780_v43  ;;  %2880 = vmatprep.subr.bf16.mxu0 %v4785_v12  ;;  %v4818_v43 = vld [vmem:[#allocation8 + $0x284] ss:$24 sps:$4 sm:$0xff]  }
 0x12c   :  { %3073 = vmatprep.subr.bf16.mxu1 %v4788_v44  ;;  %1303 = vmatmul.mubr.bf16.gmra.mrb[80].mxu0 %v5110_v2  ;;  %v5248_v2 = vpack.c.bf16 %v199_v61, %v197_v24  ;;  %v200_v12 = vld [vmem:[#allocation5 + $0xe0] sm:$0xff]  ;;  %v202_v44 = vld [vmem:[#allocation5 + $0xf0] sm:$0xff] }
 0x12d   :  { %2744 = vmatmul.mubr.bf16.gmra.mrb[80].mxu1 %v5238_v47  ;;  %1312 = vmatprep.mubr.bf16.mxu0 %v5112_v3  ;;  %v4795_v3 = vld [vmem:[#allocation8 + $0x1e8] ss:$24 sps:$4 sm:$0xff]   ;;  %v5262_v24 = vpack.c.bf16 %v202_v44, %v200_v12 }
 0x12e   :  { %2753 = vmatprep.mubr.bf16.mxu1 %v5240_v52  ;;  %2881 = vmatpush1.bf16.msra.mxu0 %v4783_v53  ;;  %v205_v53 = vld [vmem:[#allocation5 + $0x108] sm:$0xff] }
 0x12f   :  { %3074 = vmatpush1.bf16.msra.mxu1 %v4786_v48  ;;  %2882 = vmatprep.subr.bf16.mxu0 %v4791_v49  ;;  %v207_v48 = vld [vmem:[#allocation5 + $0x118] sm:$0xff]  ;;  %v4822_v61 = vld [vmem:[#allocation8 + $0x2b0] ss:$24 sps:$4 sm:$0xff]  }
 0x130   :  { %3075 = vmatprep.subr.bf16.mxu1 %v4794_v55  ;;  %v4813_v49 = vld [vmem:[#allocation8 + $0x278] ss:$24 sps:$4 sm:$0xff]  }
 0x131   :  { %v4816_v55 = vld [vmem:[#allocation8 + $0x280] ss:$24 sps:$4 sm:$0xff]  }
 0x132   :  { %2883 = vmatpush1.bf16.msra.mxu0 %v4789_v0  ;;  %v4827_v0 = vld [vmem:[#allocation8 + $0x2dc] ss:$24 sps:$4 sm:$0xff]  }
 0x133   :  { %3076 = vmatpush1.bf16.msra.mxu1 %v4792_v1  ;;  %2884 = vmatprep.subr.bf16.mxu0 %v4797_v4  ;;  %v4830_v1 = vld [vmem:[#allocation8 + $0x2e4] ss:$24 sps:$4 sm:$0xff]  }
 0x134   :  { %3077 = vmatprep.subr.bf16.mxu1 %v4800_v7  ;;  %1313 = vmatmul.mubr.bf16.gmra.mrb[84].mxu0 %v5118_v18  ;;  %v5256_v18 = vpack.c.bf16 %v203_v26, %v201_v38  ;;  %v204_v4 = vld [vmem:[#allocation5 + $0x100] sm:$0xff]  ;;  %v206_v7 = vld [vmem:[#allocation5 + $0x110] sm:$0xff]  ;;  %v213_v38 = vld [vmem:[#allocation5 + $0x148] sm:$0xff] }
 0x135   :  { %2754 = vmatmul.mubr.bf16.gmra.mrb[84].mxu1 %v5246_v10  ;;  %1322 = vmatprep.mubr.bf16.mxu0 %v5120_v19  ;;  %v4807_v19 = vld [vmem:[#allocation8 + $0x248] ss:$24 sps:$4 sm:$0xff]   ;;  %v5270_v20 = vpack.c.bf16 %v206_v7, %v204_v4  ;;  %v215_v26 = vld [vmem:[#allocation5 + $0x158] sm:$0xff]  ;;  %v222_v7 = vld [vmem:[#allocation5 + $0x190] sm:$0xff] }
 0x136   :  { %2763 = vmatprep.mubr.bf16.mxu1 %v5248_v2  ;;  %2885 = vmatpush1.bf16.msra.mxu0 %v4795_v3  ;;  %v209_v3 = vld [vmem:[#allocation5 + $0x128] sm:$0xff]  ;;  %v220_v4 = vld [vmem:[#allocation5 + $0x180] sm:$0xff] }
 0x137   :  { %3078 = vmatpush1.bf16.msra.mxu1 %v4798_v11  ;;  %2886 = vmatprep.subr.bf16.mxu0 %v4803_v16  ;;  %v211_v11 = vld [vmem:[#allocation5 + $0x138] sm:$0xff] }
 0x138   :  { %3079 = vmatprep.subr.bf16.mxu1 %v4806_v17  ;;  %v4825_v16 = vld [vmem:[#allocation8 + $0x2d8] ss:$24 sps:$4 sm:$0xff]   ;;  %v5272_v51 = vpack.c.bf16 %v211_v11, %v209_v3  ;;  %v225_v3 = vld [vmem:[#allocation5 + $0x1a8] sm:$0xff] }
 0x139   :  { %v4828_v17 = vld [vmem:[#allocation8 + $0x2e0] ss:$24 sps:$4 sm:$0xff]  }
 0x13a   :  { %2887 = vmatpush1.bf16.msra.mxu0 %v4801_v27  ;;  %v227_v11 = vld [vmem:[#allocation5 + $0x1b8] sm:$0xff] }
 0x13b   :  { %3080 = vmatpush1.bf16.msra.mxu1 %v4804_v28  ;;  %2888 = vmatprep.subr.bf16.mxu0 %v4809_v31  ;;  %v5280_v28 = vpack.c.bf16 %v215_v26, %v213_v38  ;;  %v217_v31 = vld [vmem:[#allocation5 + $0x168] sm:$0xff]  ;;  %v5302_v38 = vpack.c.bf16 %v222_v7, %v220_v4 }
 0x13c   :  { %3081 = vmatprep.subr.bf16.mxu1 %v4812_v32  ;;  %1323 = vmatmul.mubr.bf16.gmra.mrb[88].mxu0 %v5126_v34  ;;  %v5264_v34 = vpack.c.bf16 %v207_v48, %v205_v53  ;;  %v219_v32 = vld [vmem:[#allocation5 + $0x178] sm:$0xff] }
 0x13d   :  { %2764 = vmatmul.mubr.bf16.gmra.mrb[88].mxu1 %v5254_v36  ;;  %1332 = vmatprep.mubr.bf16.mxu0 %v5128_v35  ;;  %v4819_v35 = vld [vmem:[#allocation8 + $0x2a8] ss:$24 sps:$4 sm:$0xff]  }
 0x13e   :  { %2773 = vmatprep.mubr.bf16.mxu1 %v5256_v18  ;;  %2889 = vmatpush1.bf16.msra.mxu0 %v4807_v19 }
 0x13f   :  { %3082 = vmatpush1.bf16.msra.mxu1 %v4810_v41  ;;  %2890 = vmatprep.subr.bf16.mxu0 %v4815_v42  ;;  %v5288_v41 = vpack.c.bf16 %v219_v32, %v217_v31  ;;  %v221_v42 = vld [vmem:[#allocation5 + $0x188] sm:$0xff]  ;;  %v5304_v31 = vpack.c.bf16 %v227_v11, %v225_v3  ;;  %v228_v3 = vld [vmem:[#allocation5 + $0x1c0] sm:$0xff]  ;;  %v230_v11 = vld [vmem:[#allocation5 + $0x1d0] sm:$0xff] }
 0x140   :  { %3083 = vmatprep.subr.bf16.mxu1 %v4818_v43  ;;  %v223_v43 = vld [vmem:[#allocation5 + $0x198] sm:$0xff] }
 0x142   :  { %2891 = vmatpush1.bf16.msra.mxu0 %v4813_v49 }
 0x143   :  { %3084 = vmatpush1.bf16.msra.mxu1 %v4816_v55  ;;  %2892 = vmatprep.subr.bf16.mxu0 %v4821_v58 }
 0x144   :  { %3085 = vmatprep.subr.bf16.mxu1 %v4824_v59  ;;  %1333 = vmatmul.mubr.bf16.gmra.mrb[92].mxu0 %v5134_v50  ;;  %v208_v50 = vld [vmem:[#allocation5 + $0x120] sm:$0xff] }
 0x145   :  { %2774 = vmatmul.mubr.bf16.gmra.mrb[92].mxu1 %v5262_v24  ;;  %1342 = vmatprep.mubr.bf16.mxu0 %v5136_v54  ;;  %v210_v54 = vld [vmem:[#allocation5 + $0x130] sm:$0xff] }
 0x146   :  { %2783 = vmatprep.mubr.bf16.mxu1 %v5264_v34  ;;  %2893 = vmatpush1.bf16.msra.mxu0 %v4819_v35  ;;  %v5278_v27 = vpack.c.bf16 %v210_v54, %v208_v50  ;;  %v5296_v35 = vpack.c.bf16 %v223_v43, %v221_v42  ;;  %v224_v42 = vld [vmem:[#allocation5 + $0x1a0] sm:$0xff]  ;;  %v226_v43 = vld [vmem:[#allocation5 + $0x1b0] sm:$0xff] }
 0x147   :  { %3086 = vmatpush1.bf16.msra.mxu1 %v4822_v61  ;;  %2894 = vmatprep.subr.bf16.mxu0 %v4827_v0 }
 0x148   :  { %3087 = vmatprep.subr.bf16.mxu1 %v4830_v1 }
 0x14a   :  { %2895 = vmatpush1.bf16.msra.mxu0 %v4825_v16 }
 0x14b   :  { %3088 = vmatpush1.bf16.msra.mxu1 %v4828_v17 }
 0x14c   :  { %1343 = vmatmul.mubr.bf16.gmra.mrb[96].mxu0 %v5142_v5  ;;  %v212_v5 = vld [vmem:[#allocation5 + $0x140] sm:$0xff] }
 0x14d   :  { %2784 = vmatmul.mubr.bf16.gmra.mrb[96].mxu1 %v5270_v20  ;;  %1352 = vmatprep.mubr.bf16.mxu0 %v5144_v6  ;;  %v214_v6 = vld [vmem:[#allocation5 + $0x150] sm:$0xff] }
 0x14e   :  { %2793 = vmatprep.mubr.bf16.mxu1 %v5272_v51  ;;  %v5286_v19 = vpack.c.bf16 %v214_v6, %v212_v5 }
 0x154   :  { %1353 = vmatmul.mubr.bf16.gmra.mrb[100].mxu0 %v5150_v13  ;;  %v216_v13 = vld [vmem:[#allocation5 + $0x160] sm:$0xff] }
 0x155   :  { %2794 = vmatmul.mubr.bf16.gmra.mrb[100].mxu1 %v5278_v27  ;;  %1362 = vmatprep.mubr.bf16.mxu0 %v5152_v14  ;;  %v218_v14 = vld [vmem:[#allocation5 + $0x170] sm:$0xff] }
 0x156   :  { %2803 = vmatprep.mubr.bf16.mxu1 %v5280_v28  ;;  %v5294_v49 = vpack.c.bf16 %v218_v14, %v216_v13 }
 0x15c   :  { %1363 = vmatmul.mubr.bf16.gmra.mrb[104].mxu0 %v5158_v21 }
 0x15d   :  { %2804 = vmatmul.mubr.bf16.gmra.mrb[104].mxu1 %v5286_v19  ;;  %1372 = vmatprep.mubr.bf16.mxu0 %v5160_v22 }
 0x15e   :  { %2813 = vmatprep.mubr.bf16.mxu1 %v5288_v41 }
 0x15f   :  { %v878_v12 = vpop.f32.mrb[0].mxu0 }
 0x160   :  { %v1071_v44 = vpop.f32.mrb[0].mxu1  ;;  %v880_v53 = vpop.f32.mrb[1].mxu0 }
 0x161   :  { %v1073_v48 = vpop.f32.mrb[1].mxu1  ;;  %v4341_v55 = vpack.c.bf16 %v880_v53, %v878_v12  ;;  %v882_v59 = vpop.f32.mrb[2].mxu0  ;;  %v229_v12 = vld [vmem:[#allocation5 + $0x1c8] sm:$0xff] }
 0x162   :  { %v4342_v58 = vpack.c.bf16 %v1073_v48, %v1071_v44  ;;  %v1075_v21 = vpop.f32.mrb[2].mxu1  ;;  %v884_v61 = vpop.f32.mrb[3].mxu0  ;;  %v231_v44 = vld [vmem:[#allocation5 + $0x1d8] sm:$0xff] }
 0x163   :  { %v1077_v22 = vpop.f32.mrb[3].mxu1  ;;  %1999 = vst [vmem:[#allocation10] sm:$0xff] %v4341_v55  ;;  %v4344_v0 = vpack.c.bf16 %v884_v61, %v882_v59  ;;  %v5310_v59 = vpack.c.bf16 %v226_v43, %v224_v42 }
 0x164   :  { %2000 = vst [vmem:[#allocation10 + $0x8] sm:$0xff] %v4342_v58  ;;  %v4345_v1 = vpack.c.bf16 %v1077_v22, %v1075_v21  ;;  %1373 = vmatmul.mubr.bf16.gmra.mrb[108].mxu0 %v5166_v29 }
 0x165   :  { %2814 = vmatmul.mubr.bf16.gmra.mrb[108].mxu1 %v5294_v49  ;;  %2002 = vst [vmem:[#allocation10 + $0x18] sm:$0xff] %v4344_v0  ;;  %1382 = vmatprep.mubr.bf16.mxu0 %v5168_v30  ;;  %v5312_v0 = vpack.c.bf16 %v231_v44, %v229_v12  ;;  %v232_v12 = vld [vmem:[#allocation5 + $0x1e0] sm:$0xff]  ;;  %v234_v44 = vld [vmem:[#allocation5 + $0x1f0] sm:$0xff] }
 0x166   :  { %2003 = vst [vmem:[#allocation10 + $0x20] sm:$0xff] %v4345_v1  ;;  %2823 = vmatprep.mubr.bf16.mxu1 %v5296_v35 }
 0x167   :  { %v888_v16 = vpop.f32.mrb[4].mxu0 }
 0x168   :  { %v1081_v17 = vpop.f32.mrb[4].mxu1  ;;  %v890_v50 = vpop.f32.mrb[5].mxu0 }
 0x169   :  { %v1083_v54 = vpop.f32.mrb[5].mxu1  ;;  %v4347_v26 = vpack.c.bf16 %v890_v50, %v888_v16  ;;  %v892_v5 = vpop.f32.mrb[6].mxu0  ;;  %v233_v16 = vld [vmem:[#allocation5 + $0x1e8] sm:$0xff] }
 0x16a   :  { %v4348_v29 = vpack.c.bf16 %v1083_v54, %v1081_v17  ;;  %v1085_v6 = vpop.f32.mrb[6].mxu1  ;;  %v894_v32 = vpop.f32.mrb[7].mxu0  ;;  %v235_v17 = vld [vmem:[#allocation5 + $0x1f8] sm:$0xff] }
 0x16b   :  { %v1087_v30 = vpop.f32.mrb[7].mxu1  ;;  %2005 = vst [vmem:[#allocation10 + $0x30] sm:$0xff] %v4347_v26  ;;  %v4350_v13 = vpack.c.bf16 %v894_v32, %v892_v5  ;;  %v5318_v5 = vpack.c.bf16 %v230_v11, %v228_v3 }
 0x16c   :  { %2006 = vst [vmem:[#allocation10 + $0x38] sm:$0xff] %v4348_v29  ;;  %v4351_v14 = vpack.c.bf16 %v1087_v30, %v1085_v6  ;;  %1383 = vmatmul.mubr.bf16.gmra.mrb[112].mxu0 %v5174_v39 }
 0x16d   :  { %2824 = vmatmul.mubr.bf16.gmra.mrb[112].mxu1 %v5302_v38  ;;  %2008 = vst [vmem:[#allocation10 + $0x48] sm:$0xff] %v4350_v13  ;;  %1392 = vmatprep.mubr.bf16.mxu0 %v5176_v40  ;;  %v5320_v13 = vpack.c.bf16 %v235_v17, %v233_v16 }
 0x16e   :  { %2009 = vst [vmem:[#allocation10 + $0x50] sm:$0xff] %v4351_v14  ;;  %2833 = vmatprep.mubr.bf16.mxu1 %v5304_v31 }
 0x16f   :  { %v898_v53 = vpop.f32.mrb[8].mxu0 }
 0x170   :  { %v1091_v48 = vpop.f32.mrb[8].mxu1  ;;  %v900_v55 = vpop.f32.mrb[9].mxu0 }
 0x171   :  { %v1093_v58 = vpop.f32.mrb[9].mxu1  ;;  %v4353_v21 = vpack.c.bf16 %v900_v55, %v898_v53  ;;  %v902_v61 = vpop.f32.mrb[10].mxu0 }
 0x172   :  { %v4354_v39 = vpack.c.bf16 %v1093_v58, %v1091_v48  ;;  %v1095_v22 = vpop.f32.mrb[10].mxu1  ;;  %v904_v1 = vpop.f32.mrb[11].mxu0 }
 0x173   :  { %v1097_v40 = vpop.f32.mrb[11].mxu1  ;;  %2011 = vst [vmem:[#allocation10 + $0x60] sm:$0xff] %v4353_v21  ;;  %v4356_v4 = vpack.c.bf16 %v904_v1, %v902_v61  ;;  %v5326_v21 = vpack.c.bf16 %v234_v44, %v232_v12 }
 0x174   :  { %2012 = vst [vmem:[#allocation10 + $0x68] sm:$0xff] %v4354_v39  ;;  %v4357_v7 = vpack.c.bf16 %v1097_v40, %v1095_v22  ;;  %1393 = vmatmul.mubr.bf16.gmra.mrb[116].mxu0 %v5182_v45 }
 0x175   :  { %2834 = vmatmul.mubr.bf16.gmra.mrb[116].mxu1 %v5310_v59  ;;  %2014 = vst [vmem:[#allocation10 + $0x78] sm:$0xff] %v4356_v4  ;;  %1402 = vmatprep.mubr.bf16.mxu0 %v5184_v46 }
 0x176   :  { %2015 = vst [vmem:[#allocation10 + $0x80] sm:$0xff] %v4357_v7  ;;  %2843 = vmatprep.mubr.bf16.mxu1 %v5312_v0 }
 0x177   :  { %v908_v50 = vpop.f32.mrb[12].mxu0 }
 0x178   :  { %v1101_v54 = vpop.f32.mrb[12].mxu1  ;;  %v910_v26 = vpop.f32.mrb[13].mxu0 }
 0x179   :  { %v1103_v29 = vpop.f32.mrb[13].mxu1  ;;  %v4359_v6 = vpack.c.bf16 %v910_v26, %v908_v50  ;;  %v912_v32 = vpop.f32.mrb[14].mxu0 }
 0x17a   :  { %v4360_v45 = vpack.c.bf16 %v1103_v29, %v1101_v54  ;;  %v1105_v30 = vpop.f32.mrb[14].mxu1  ;;  %v914_v14 = vpop.f32.mrb[15].mxu0 }
 0x17b   :  { %v1107_v46 = vpop.f32.mrb[15].mxu1  ;;  %2017 = vst [vmem:[#allocation10 + $0x90] sm:$0xff] %v4359_v6  ;;  %v4362_v42 = vpack.c.bf16 %v914_v14, %v912_v32 }
 0x17c   :  { %2018 = vst [vmem:[#allocation10 + $0x98] sm:$0xff] %v4360_v45  ;;  %v4363_v43 = vpack.c.bf16 %v1107_v46, %v1105_v30  ;;  %1403 = vmatmul.mubr.bf16.gmra.mrb[120].mxu0 %v5190_v56 }
 0x17d   :  { %2844 = vmatmul.mubr.bf16.gmra.mrb[120].mxu1 %v5318_v5  ;;  %2020 = vst [vmem:[#allocation10 + $0xa8] sm:$0xff] %v4362_v42  ;;  %1412 = vmatprep.mubr.bf16.mxu0 %v5192_v57 }
 0x17e   :  { %2021 = vst [vmem:[#allocation10 + $0xb0] sm:$0xff] %v4363_v43  ;;  %2853 = vmatprep.mubr.bf16.mxu1 %v5320_v13 }
 0x17f   :  { %v918_v53 = vpop.f32.mrb[16].mxu0 }
 0x180   :  { %v1111_v48 = vpop.f32.mrb[16].mxu1  ;;  %v920_v55 = vpop.f32.mrb[17].mxu0 }
 0x181   :  { %v1113_v58 = vpop.f32.mrb[17].mxu1  ;;  %v4365_v39 = vpack.c.bf16 %v920_v55, %v918_v53  ;;  %v922_v22 = vpop.f32.mrb[18].mxu0 }
 0x182   :  { %v4366_v61 = vpack.c.bf16 %v1113_v58, %v1111_v48  ;;  %v1115_v56 = vpop.f32.mrb[18].mxu1  ;;  %v924_v1 = vpop.f32.mrb[19].mxu0 }
 0x183   :  { %v1117_v40 = vpop.f32.mrb[19].mxu1  ;;  %2023 = vst [vmem:[#allocation10 + $0xc0] sm:$0xff] %v4365_v39  ;;  %v4368_v4 = vpack.c.bf16 %v924_v1, %v922_v22 }
 0x184   :  { %2024 = vst [vmem:[#allocation10 + $0xc8] sm:$0xff] %v4366_v61  ;;  %v4369_v57 = vpack.c.bf16 %v1117_v40, %v1115_v56  ;;  %1413 = vmatmul.mubr.bf16.gmra.mrb[124].mxu0 %v5198_v62 }
 0x185   :  { %2854 = vmatmul.mubr.bf16.gmra.mrb[124].mxu1 %v5326_v21  ;;  %2026 = vst [vmem:[#allocation10 + $0xd8] sm:$0xff] %v4368_v4  ;;  %2896 = vmatprep.mubr.bf16.mxu0 %v5200_v63 }
 0x186   :  { %2027 = vst [vmem:[#allocation10 + $0xe0] sm:$0xff] %v4369_v57  ;;  %3089 = vmatprep.mubr.bf16.mxu1 %v5200_v63 }
 0x187   :  { %v928_v7 = vpop.f32.mrb[20].mxu0 }
 0x188   :  { %v1121_v3 = vpop.f32.mrb[20].mxu1  ;;  %v930_v11 = vpop.f32.mrb[21].mxu0 }
 0x189   :  { %v1123_v16 = vpop.f32.mrb[21].mxu1  ;;  %v4371_v17 = vpack.c.bf16 %v930_v11, %v928_v7  ;;  %v932_v54 = vpop.f32.mrb[22].mxu0 }
 0x18a   :  { %v4372_v50 = vpack.c.bf16 %v1123_v16, %v1121_v3  ;;  %v1125_v26 = vpop.f32.mrb[22].mxu1  ;;  %v934_v29 = vpop.f32.mrb[23].mxu0 }
 0x18b   :  { %v1127_v6 = vpop.f32.mrb[23].mxu1  ;;  %2029 = vst [vmem:[#allocation10 + $0xf0] sm:$0xff] %v4371_v17  ;;  %v4374_v62 = vpack.c.bf16 %v934_v29, %v932_v54 }
 0x18c   :  { %2030 = vst [vmem:[#allocation10 + $0xf8] sm:$0xff] %v4372_v50  ;;  %v4375_v45 = vpack.c.bf16 %v1127_v6, %v1125_v26  ;;  %2897 = vmatmul.mubr.bf16.vlgmr.msra.gmra.mrb[128].mxu0 %v5206_v8 }
 0x18d   :  { %3090 = vmatmul.mubr.bf16.vlgmr.msra.gmra.mrb[128].mxu1 %v5206_v8  ;;  %2032 = vst [vmem:[#allocation10 + $0x108] sm:$0xff] %v4374_v62  ;;  %2906 = vmatprep.mubr.bf16.mxu0 %v5208_v15 }
 0x18e   :  { %2033 = vst [vmem:[#allocation10 + $0x110] sm:$0xff] %v4375_v45  ;;  %3099 = vmatprep.mubr.bf16.mxu1 %v5208_v15 }
 0x18f   :  { %v938_v63 = vpop.f32.mrb[24].mxu0 }
 0x190   :  { %v1131_v32 = vpop.f32.mrb[24].mxu1  ;;  %v940_v30 = vpop.f32.mrb[25].mxu0 }
 0x191   :  { %v1133_v14 = vpop.f32.mrb[25].mxu1  ;;  %v4377_v46 = vpack.c.bf16 %v940_v30, %v938_v63  ;;  %v942_v43 = vpop.f32.mrb[26].mxu0 }
 0x192   :  { %v4378_v42 = vpack.c.bf16 %v1133_v14, %v1131_v32  ;;  %v1135_v12 = vpop.f32.mrb[26].mxu1  ;;  %v944_v44 = vpop.f32.mrb[27].mxu0 }
 0x193   :  { %v1137_v53 = vpop.f32.mrb[27].mxu1  ;;  %2035 = vst [vmem:[#allocation10 + $0x120] sm:$0xff] %v4377_v46  ;;  %v4380_v48 = vpack.c.bf16 %v944_v44, %v942_v43 }
 0x194   :  { %2036 = vst [vmem:[#allocation10 + $0x128] sm:$0xff] %v4378_v42  ;;  %v4381_v8 = vpack.c.bf16 %v1137_v53, %v1135_v12  ;;  %2907 = vmatmul.mubr.bf16.gmra.mrb[132].mxu0 %v5214_v33 }
 0x195   :  { %3100 = vmatmul.mubr.bf16.gmra.mrb[132].mxu1 %v5214_v33  ;;  %2038 = vst [vmem:[#allocation10 + $0x138] sm:$0xff] %v4380_v48  ;;  %2916 = vmatprep.mubr.bf16.mxu0 %v5216_v9 }
 0x196   :  { %2039 = vst [vmem:[#allocation10 + $0x140] sm:$0xff] %v4381_v8  ;;  %3109 = vmatprep.mubr.bf16.mxu1 %v5216_v9 }
 0x197   :  { %v948_v15 = vpop.f32.mrb[28].mxu0 }
 0x198   :  { %v1141_v55 = vpop.f32.mrb[28].mxu1  ;;  %v950_v58 = vpop.f32.mrb[29].mxu0 }
 0x199   :  { %v1143_v39 = vpop.f32.mrb[29].mxu1  ;;  %v4383_v61 = vpack.c.bf16 %v950_v58, %v948_v15  ;;  %v952_v56 = vpop.f32.mrb[30].mxu0 }
 0x19a   :  { %v4384_v22 = vpack.c.bf16 %v1143_v39, %v1141_v55  ;;  %v1145_v1 = vpop.f32.mrb[30].mxu1  ;;  %v954_v40 = vpop.f32.mrb[31].mxu0 }
 0x19b   :  { %v1147_v4 = vpop.f32.mrb[31].mxu1  ;;  %2041 = vst [vmem:[#allocation10 + $0x150] sm:$0xff] %v4383_v61  ;;  %v4386_v57 = vpack.c.bf16 %v954_v40, %v952_v56 }
 0x19c   :  { %2042 = vst [vmem:[#allocation10 + $0x158] sm:$0xff] %v4384_v22  ;;  %v4387_v33 = vpack.c.bf16 %v1147_v4, %v1145_v1  ;;  %2917 = vmatmul.mubr.bf16.gmra.mrb[136].mxu0 %v5222_v60 }
 0x19d   :  { %3110 = vmatmul.mubr.bf16.gmra.mrb[136].mxu1 %v5222_v60  ;;  %2044 = vst [vmem:[#allocation10 + $0x168] sm:$0xff] %v4386_v57  ;;  %2926 = vmatprep.mubr.bf16.mxu0 %v5224_v23 }
 0x19e   :  { %2045 = vst [vmem:[#allocation10 + $0x170] sm:$0xff] %v4387_v33  ;;  %3119 = vmatprep.mubr.bf16.mxu1 %v5224_v23 }
 0x19f   :  { %v958_v9 = vpop.f32.mrb[32].mxu0 }
 0x1a0   :  { %v1151_v7 = vpop.f32.mrb[32].mxu1  ;;  %v960_v3 = vpop.f32.mrb[33].mxu0 }
 0x1a1   :  { %v1153_v11 = vpop.f32.mrb[33].mxu1  ;;  %v4389_v16 = vpack.c.bf16 %v960_v3, %v958_v9  ;;  %v962_v50 = vpop.f32.mrb[34].mxu0 }
 0x1a2   :  { %v4390_v17 = vpack.c.bf16 %v1153_v11, %v1151_v7  ;;  %v1155_v54 = vpop.f32.mrb[34].mxu1  ;;  %v964_v26 = vpop.f32.mrb[35].mxu0 }
 0x1a3   :  { %v1157_v29 = vpop.f32.mrb[35].mxu1  ;;  %2047 = vst [vmem:[#allocation10 + $0x180] sm:$0xff] %v4389_v16  ;;  %v4392_v6 = vpack.c.bf16 %v964_v26, %v962_v50 }
 0x1a4   :  { %2048 = vst [vmem:[#allocation10 + $0x188] sm:$0xff] %v4390_v17  ;;  %v4393_v60 = vpack.c.bf16 %v1157_v29, %v1155_v54  ;;  %2927 = vmatmul.mubr.bf16.gmra.mrb[140].mxu0 %v5230_v25 }
 0x1a5   :  { %3120 = vmatmul.mubr.bf16.gmra.mrb[140].mxu1 %v5230_v25  ;;  %2050 = vst [vmem:[#allocation10 + $0x198] sm:$0xff] %v4392_v6  ;;  %2936 = vmatprep.mubr.bf16.mxu0 %v5232_v37 }
 0x1a6   :  { %2051 = vst [vmem:[#allocation10 + $0x1a0] sm:$0xff] %v4393_v60  ;;  %3129 = vmatprep.mubr.bf16.mxu1 %v5232_v37 }
 0x1a7   :  { %v968_v23 = vpop.f32.mrb[36].mxu0 }
 0x1a8   :  { %v1161_v62 = vpop.f32.mrb[36].mxu1  ;;  %v970_v45 = vpop.f32.mrb[37].mxu0 }
 0x1a9   :  { %v1163_v63 = vpop.f32.mrb[37].mxu1  ;;  %v4395_v32 = vpack.c.bf16 %v970_v45, %v968_v23  ;;  %v972_v14 = vpop.f32.mrb[38].mxu0 }
 0x1aa   :  { %v4396_v30 = vpack.c.bf16 %v1163_v63, %v1161_v62  ;;  %v1165_v46 = vpop.f32.mrb[38].mxu1  ;;  %v974_v42 = vpop.f32.mrb[39].mxu0 }
 0x1ab   :  { %v1167_v43 = vpop.f32.mrb[39].mxu1  ;;  %2053 = vst [vmem:[#allocation10 + $0x1b0] sm:$0xff] %v4395_v32  ;;  %v4398_v12 = vpack.c.bf16 %v974_v42, %v972_v14 }
 0x1ac   :  { %2054 = vst [vmem:[#allocation10 + $0x1b8] sm:$0xff] %v4396_v30  ;;  %v4399_v25 = vpack.c.bf16 %v1167_v43, %v1165_v46  ;;  %2937 = vmatmul.mubr.bf16.gmra.mrb[144].mxu0 %v5238_v47 }
 0x1ad   :  { %3130 = vmatmul.mubr.bf16.gmra.mrb[144].mxu1 %v5238_v47  ;;  %2056 = vst [vmem:[#allocation10 + $0x1c8] sm:$0xff] %v4398_v12  ;;  %2946 = vmatprep.mubr.bf16.mxu0 %v5240_v52 }
 0x1ae   :  { %2057 = vst [vmem:[#allocation10 + $0x1d0] sm:$0xff] %v4399_v25  ;;  %3139 = vmatprep.mubr.bf16.mxu1 %v5240_v52 }
 0x1af   :  { %v978_v37 = vpop.f32.mrb[40].mxu0 }
 0x1b0   :  { %v1171_v44 = vpop.f32.mrb[40].mxu1  ;;  %v980_v53 = vpop.f32.mrb[41].mxu0 }
 0x1b1   :  { %v1173_v48 = vpop.f32.mrb[41].mxu1  ;;  %v4401_v8 = vpack.c.bf16 %v980_v53, %v978_v37  ;;  %v982_v55 = vpop.f32.mrb[42].mxu0 }
 0x1b2   :  { %v4402_v15 = vpack.c.bf16 %v1173_v48, %v1171_v44  ;;  %v1175_v58 = vpop.f32.mrb[42].mxu1  ;;  %v984_v39 = vpop.f32.mrb[43].mxu0 }
 0x1b3   :  { %v1177_v61 = vpop.f32.mrb[43].mxu1  ;;  %2059 = vst [vmem:[#allocation10 + $0x1e0] sm:$0xff] %v4401_v8  ;;  %v4404_v22 = vpack.c.bf16 %v984_v39, %v982_v55 }
 0x1b4   :  { %2060 = vst [vmem:[#allocation10 + $0x1e8] sm:$0xff] %v4402_v15  ;;  %v4405_v47 = vpack.c.bf16 %v1177_v61, %v1175_v58  ;;  %2947 = vmatmul.mubr.bf16.gmra.mrb[148].mxu0 %v5246_v10 }
 0x1b5   :  { %3140 = vmatmul.mubr.bf16.gmra.mrb[148].mxu1 %v5246_v10  ;;  %2062 = vst [vmem:[#allocation10 + $0x1f8] sm:$0xff] %v4404_v22  ;;  %2956 = vmatprep.mubr.bf16.mxu0 %v5248_v2 }
 0x1b6   :  { %2063 = vst [vmem:[#allocation10 + $0x200] sm:$0xff] %v4405_v47  ;;  %3149 = vmatprep.mubr.bf16.mxu1 %v5248_v2 }
 0x1b7   :  { %v988_v52 = vpop.f32.mrb[44].mxu0 }
 0x1b8   :  { %v1181_v56 = vpop.f32.mrb[44].mxu1  ;;  %v990_v1 = vpop.f32.mrb[45].mxu0 }
 0x1b9   :  { %v1183_v40 = vpop.f32.mrb[45].mxu1  ;;  %v4407_v4 = vpack.c.bf16 %v990_v1, %v988_v52  ;;  %v992_v33 = vpop.f32.mrb[46].mxu0 }
 0x1ba   :  { %v4408_v57 = vpack.c.bf16 %v1183_v40, %v1181_v56  ;;  %v1185_v9 = vpop.f32.mrb[46].mxu1  ;;  %v994_v7 = vpop.f32.mrb[47].mxu0 }
 0x1bb   :  { %v1187_v3 = vpop.f32.mrb[47].mxu1  ;;  %2065 = vst [vmem:[#allocation10 + $0x210] sm:$0xff] %v4407_v4  ;;  %v4410_v11 = vpack.c.bf16 %v994_v7, %v992_v33 }
 0x1bc   :  { %2066 = vst [vmem:[#allocation10 + $0x218] sm:$0xff] %v4408_v57  ;;  %v4411_v10 = vpack.c.bf16 %v1187_v3, %v1185_v9  ;;  %2957 = vmatmul.mubr.bf16.gmra.mrb[152].mxu0 %v5254_v36 }
 0x1bd   :  { %3150 = vmatmul.mubr.bf16.gmra.mrb[152].mxu1 %v5254_v36  ;;  %2068 = vst [vmem:[#allocation10 + $0x228] sm:$0xff] %v4410_v11  ;;  %2966 = vmatprep.mubr.bf16.mxu0 %v5256_v18 }
 0x1be   :  { %2069 = vst [vmem:[#allocation10 + $0x230] sm:$0xff] %v4411_v10  ;;  %3159 = vmatprep.mubr.bf16.mxu1 %v5256_v18 }
 0x1bf   :  { %v998_v2 = vpop.f32.mrb[48].mxu0 }
 0x1c0   :  { %v1191_v16 = vpop.f32.mrb[48].mxu1  ;;  %v1000_v17 = vpop.f32.mrb[49].mxu0 }
 0x1c1   :  { %v1193_v50 = vpop.f32.mrb[49].mxu1  ;;  %v4413_v54 = vpack.c.bf16 %v1000_v17, %v998_v2  ;;  %v1002_v29 = vpop.f32.mrb[50].mxu0 }
 0x1c2   :  { %v4414_v26 = vpack.c.bf16 %v1193_v50, %v1191_v16  ;;  %v1195_v6 = vpop.f32.mrb[50].mxu1  ;;  %v1004_v60 = vpop.f32.mrb[51].mxu0 }
 0x1c3   :  { %v1197_v23 = vpop.f32.mrb[51].mxu1  ;;  %2071 = vst [vmem:[#allocation10 + $0x240] sm:$0xff] %v4413_v54  ;;  %v4416_v62 = vpack.c.bf16 %v1004_v60, %v1002_v29 }
 0x1c4   :  { %2072 = vst [vmem:[#allocation10 + $0x248] sm:$0xff] %v4414_v26  ;;  %v4417_v36 = vpack.c.bf16 %v1197_v23, %v1195_v6  ;;  %2967 = vmatmul.mubr.bf16.gmra.mrb[156].mxu0 %v5262_v24 }
 0x1c5   :  { %3160 = vmatmul.mubr.bf16.gmra.mrb[156].mxu1 %v5262_v24  ;;  %2074 = vst [vmem:[#allocation10 + $0x258] sm:$0xff] %v4416_v62  ;;  %2976 = vmatprep.mubr.bf16.mxu0 %v5264_v34 }
 0x1c6   :  { %2075 = vst [vmem:[#allocation10 + $0x260] sm:$0xff] %v4417_v36  ;;  %3169 = vmatprep.mubr.bf16.mxu1 %v5264_v34 }
 0x1c7   :  { %v1008_v18 = vpop.f32.mrb[52].mxu0 }
 0x1c8   :  { %v1201_v45 = vpop.f32.mrb[52].mxu1  ;;  %v1010_v63 = vpop.f32.mrb[53].mxu0 }
 0x1c9   :  { %v1203_v32 = vpop.f32.mrb[53].mxu1  ;;  %v4419_v30 = vpack.c.bf16 %v1010_v63, %v1008_v18  ;;  %v1012_v46 = vpop.f32.mrb[54].mxu0 }
 0x1ca   :  { %v4420_v14 = vpack.c.bf16 %v1203_v32, %v1201_v45  ;;  %v1205_v42 = vpop.f32.mrb[54].mxu1  ;;  %v1014_v43 = vpop.f32.mrb[55].mxu0 }
 0x1cb   :  { %v1207_v12 = vpop.f32.mrb[55].mxu1  ;;  %2077 = vst [vmem:[#allocation10 + $0x270] sm:$0xff] %v4419_v30  ;;  %v4422_v25 = vpack.c.bf16 %v1014_v43, %v1012_v46 }
 0x1cc   :  { %2078 = vst [vmem:[#allocation10 + $0x278] sm:$0xff] %v4420_v14  ;;  %v4423_v24 = vpack.c.bf16 %v1207_v12, %v1205_v42  ;;  %2977 = vmatmul.mubr.bf16.gmra.mrb[160].mxu0 %v5270_v20 }
 0x1cd   :  { %3170 = vmatmul.mubr.bf16.gmra.mrb[160].mxu1 %v5270_v20  ;;  %2080 = vst [vmem:[#allocation10 + $0x288] sm:$0xff] %v4422_v25  ;;  %2986 = vmatprep.mubr.bf16.mxu0 %v5272_v51 }
 0x1ce   :  { %2081 = vst [vmem:[#allocation10 + $0x290] sm:$0xff] %v4423_v24  ;;  %3179 = vmatprep.mubr.bf16.mxu1 %v5272_v51 }
 0x1cf   :  { %v1018_v34 = vpop.f32.mrb[56].mxu0 }
 0x1d0   :  { %v1211_v37 = vpop.f32.mrb[56].mxu1  ;;  %v1020_v44 = vpop.f32.mrb[57].mxu0 }
 0x1d1   :  { %v1213_v53 = vpop.f32.mrb[57].mxu1  ;;  %v4425_v48 = vpack.c.bf16 %v1020_v44, %v1018_v34  ;;  %v1022_v15 = vpop.f32.mrb[58].mxu0 }
 0x1d2   :  { %v4426_v8 = vpack.c.bf16 %v1213_v53, %v1211_v37  ;;  %v1215_v55 = vpop.f32.mrb[58].mxu1  ;;  %v1024_v58 = vpop.f32.mrb[59].mxu0 }
 0x1d3   :  { %v1217_v39 = vpop.f32.mrb[59].mxu1  ;;  %2083 = vst [vmem:[#allocation10 + $0x2a0] sm:$0xff] %v4425_v48  ;;  %v4428_v61 = vpack.c.bf16 %v1024_v58, %v1022_v15 }
 0x1d4   :  { %2084 = vst [vmem:[#allocation10 + $0x2a8] sm:$0xff] %v4426_v8  ;;  %v4429_v20 = vpack.c.bf16 %v1217_v39, %v1215_v55  ;;  %2987 = vmatmul.mubr.bf16.gmra.mrb[164].mxu0 %v5278_v27 }
 0x1d5   :  { %3180 = vmatmul.mubr.bf16.gmra.mrb[164].mxu1 %v5278_v27  ;;  %2086 = vst [vmem:[#allocation10 + $0x2b8] sm:$0xff] %v4428_v61  ;;  %2996 = vmatprep.mubr.bf16.mxu0 %v5280_v28 }
 0x1d6   :  { %2087 = vst [vmem:[#allocation10 + $0x2c0] sm:$0xff] %v4429_v20  ;;  %3189 = vmatprep.mubr.bf16.mxu1 %v5280_v28 }
 0x1d7   :  { %v1028_v51 = vpop.f32.mrb[60].mxu0 }
 0x1d8   :  { %v1221_v22 = vpop.f32.mrb[60].mxu1  ;;  %v1030_v47 = vpop.f32.mrb[61].mxu0 }
 0x1d9   :  { %v1223_v52 = vpop.f32.mrb[61].mxu1  ;;  %v4431_v56 = vpack.c.bf16 %v1030_v47, %v1028_v51  ;;  %v1032_v40 = vpop.f32.mrb[62].mxu0 }
 0x1da   :  { %v4432_v1 = vpack.c.bf16 %v1223_v52, %v1221_v22  ;;  %v1225_v4 = vpop.f32.mrb[62].mxu1  ;;  %v1034_v57 = vpop.f32.mrb[63].mxu0 }
 0x1db   :  { %v1227_v33 = vpop.f32.mrb[63].mxu1  ;;  %2089 = vst [vmem:[#allocation10 + $0x2d0] sm:$0xff] %v4431_v56  ;;  %v4434_v9 = vpack.c.bf16 %v1034_v57, %v1032_v40 }
 0x1dc   :  { %2090 = vst [vmem:[#allocation10 + $0x2d8] sm:$0xff] %v4432_v1  ;;  %v4435_v27 = vpack.c.bf16 %v1227_v33, %v1225_v4  ;;  %2997 = vmatmul.mubr.bf16.gmra.mrb[168].mxu0 %v5286_v19 }
 0x1dd   :  { %3190 = vmatmul.mubr.bf16.gmra.mrb[168].mxu1 %v5286_v19  ;;  %2092 = vst [vmem:[#allocation10 + $0x2e8] sm:$0xff] %v4434_v9  ;;  %3006 = vmatprep.mubr.bf16.mxu0 %v5288_v41 }
 0x1de   :  { %2093 = vst [vmem:[#allocation10 + $0x2f0] sm:$0xff] %v4435_v27  ;;  %3199 = vmatprep.mubr.bf16.mxu1 %v5288_v41 }
 0x1df   :  { %v1264_v28 = vpop.f32.mrb[64].mxu0 }
 0x1e0   :  { %v2705_v7 = vpop.f32.mrb[64].mxu1  ;;  %v1266_v3 = vpop.f32.mrb[65].mxu0 }
 0x1e1   :  { %v2707_v11 = vpop.f32.mrb[65].mxu1  ;;  %v4343_v10 = vpack.c.bf16 %v1266_v3, %v1264_v28  ;;  %v1268_v16 = vpop.f32.mrb[66].mxu0 }
 0x1e2   :  { %v4437_v2 = vpack.c.bf16 %v2707_v11, %v2705_v7  ;;  %v2709_v17 = vpop.f32.mrb[66].mxu1  ;;  %v1270_v50 = vpop.f32.mrb[67].mxu0 }
 0x1e3   :  { %v2711_v54 = vpop.f32.mrb[67].mxu1  ;;  %2001 = vst [vmem:[#allocation10 + $0x10] sm:$0xff] %v4343_v10  ;;  %v4346_v26 = vpack.c.bf16 %v1270_v50, %v1268_v16 }
 0x1e4   :  { %3826 = vst [vmem:[#allocation11] sm:$0xff] %v4437_v2  ;;  %v4440_v19 = vpack.c.bf16 %v2711_v54, %v2709_v17  ;;  %3007 = vmatmul.mubr.bf16.gmra.mrb[172].mxu0 %v5294_v49 }
 0x1e5   :  { %3200 = vmatmul.mubr.bf16.gmra.mrb[172].mxu1 %v5294_v49  ;;  %2004 = vst [vmem:[#allocation10 + $0x28] sm:$0xff] %v4346_v26  ;;  %3016 = vmatprep.mubr.bf16.mxu0 %v5296_v35 }
 0x1e6   :  { %3829 = vst [vmem:[#allocation11 + $0x18] sm:$0xff] %v4440_v19  ;;  %3209 = vmatprep.mubr.bf16.mxu1 %v5296_v35 }
 0x1e7   :  { %v1274_v41 = vpop.f32.mrb[68].mxu0 }
 0x1e8   :  { %v2715_v29 = vpop.f32.mrb[68].mxu1  ;;  %v1276_v6 = vpop.f32.mrb[69].mxu0 }
 0x1e9   :  { %v2717_v60 = vpop.f32.mrb[69].mxu1  ;;  %v4349_v23 = vpack.c.bf16 %v1276_v6, %v1274_v41  ;;  %v1278_v36 = vpop.f32.mrb[70].mxu0 }
 0x1ea   :  { %v4443_v62 = vpack.c.bf16 %v2717_v60, %v2715_v29  ;;  %v2719_v18 = vpop.f32.mrb[70].mxu1  ;;  %v1280_v45 = vpop.f32.mrb[71].mxu0 }
 0x1eb   :  { %v2721_v63 = vpop.f32.mrb[71].mxu1  ;;  %2007 = vst [vmem:[#allocation10 + $0x40] sm:$0xff] %v4349_v23  ;;  %v4352_v32 = vpack.c.bf16 %v1280_v45, %v1278_v36 }
 0x1ec   :  { %3832 = vst [vmem:[#allocation11 + $0x30] sm:$0xff] %v4443_v62  ;;  %v4446_v49 = vpack.c.bf16 %v2721_v63, %v2719_v18  ;;  %3017 = vmatmul.mubr.bf16.gmra.mrb[176].mxu0 %v5302_v38 }
 0x1ed   :  { %3210 = vmatmul.mubr.bf16.gmra.mrb[176].mxu1 %v5302_v38  ;;  %2010 = vst [vmem:[#allocation10 + $0x58] sm:$0xff] %v4352_v32  ;;  %3026 = vmatprep.mubr.bf16.mxu0 %v5304_v31 }
 0x1ee   :  { %3835 = vst [vmem:[#allocation11 + $0x48] sm:$0xff] %v4446_v49  ;;  %3219 = vmatprep.mubr.bf16.mxu1 %v5304_v31 }
 0x1ef   :  { %v1284_v35 = vpop.f32.mrb[72].mxu0 }
 0x1f0   :  { %v2725_v30 = vpop.f32.mrb[72].mxu1  ;;  %v1286_v14 = vpop.f32.mrb[73].mxu0 }
 0x1f1   :  { %v2727_v46 = vpop.f32.mrb[73].mxu1  ;;  %v4355_v42 = vpack.c.bf16 %v1286_v14, %v1284_v35  ;;  %v1288_v12 = vpop.f32.mrb[74].mxu0 }
 0x1f2   :  { %v4449_v43 = vpack.c.bf16 %v2727_v46, %v2725_v30  ;;  %v2729_v25 = vpop.f32.mrb[74].mxu1  ;;  %v1290_v24 = vpop.f32.mrb[75].mxu0 }
 0x1f3   :  { %v2731_v34 = vpop.f32.mrb[75].mxu1  ;;  %2013 = vst [vmem:[#allocation10 + $0x70] sm:$0xff] %v4355_v42  ;;  %v4358_v37 = vpack.c.bf16 %v1290_v24, %v1288_v12 }
 0x1f4   :  { %3838 = vst [vmem:[#allocation11 + $0x60] sm:$0xff] %v4449_v43  ;;  %v4452_v38 = vpack.c.bf16 %v2731_v34, %v2729_v25  ;;  %3027 = vmatmul.mubr.bf16.gmra.mrb[180].mxu0 %v5310_v59 }
 0x1f5   :  { %3220 = vmatmul.mubr.bf16.gmra.mrb[180].mxu1 %v5310_v59  ;;  %2016 = vst [vmem:[#allocation10 + $0x88] sm:$0xff] %v4358_v37  ;;  %3036 = vmatprep.mubr.bf16.mxu0 %v5312_v0 }
 0x1f6   :  { %3841 = vst [vmem:[#allocation11 + $0x78] sm:$0xff] %v4452_v38  ;;  %3229 = vmatprep.mubr.bf16.mxu1 %v5312_v0 }
 0x1f7   :  { %v1294_v31 = vpop.f32.mrb[76].mxu0 }
 0x1f8   :  { %v2735_v44 = vpop.f32.mrb[76].mxu1  ;;  %v1296_v53 = vpop.f32.mrb[77].mxu0 }
 0x1f9   :  { %v2737_v48 = vpop.f32.mrb[77].mxu1  ;;  %v4361_v8 = vpack.c.bf16 %v1296_v53, %v1294_v31  ;;  %v1298_v55 = vpop.f32.mrb[78].mxu0 }
 0x1fa   :  { %v4455_v15 = vpack.c.bf16 %v2737_v48, %v2735_v44  ;;  %v2739_v58 = vpop.f32.mrb[78].mxu1  ;;  %v1300_v39 = vpop.f32.mrb[79].mxu0 }
 0x1fb   :  { %v2741_v61 = vpop.f32.mrb[79].mxu1  ;;  %2019 = vst [vmem:[#allocation10 + $0xa0] sm:$0xff] %v4361_v8  ;;  %v4364_v20 = vpack.c.bf16 %v1300_v39, %v1298_v55 }
 0x1fc   :  { %3844 = vst [vmem:[#allocation11 + $0x90] sm:$0xff] %v4455_v15  ;;  %v4458_v59 = vpack.c.bf16 %v2741_v61, %v2739_v58  ;;  %3037 = vmatmul.mubr.bf16.gmra.mrb[184].mxu0 %v5318_v5 }
 0x1fd   :  { %3230 = vmatmul.mubr.bf16.gmra.mrb[184].mxu1 %v5318_v5  ;;  %2022 = vst [vmem:[#allocation10 + $0xb8] sm:$0xff] %v4364_v20  ;;  %3046 = vmatprep.mubr.bf16.mxu0 %v5320_v13 }
 0x1fe   :  { %3847 = vst [vmem:[#allocation11 + $0xa8] sm:$0xff] %v4458_v59  ;;  %3239 = vmatprep.mubr.bf16.mxu1 %v5320_v13 }
 0x1ff   :  { %v1304_v0 = vpop.f32.mrb[80].mxu0 }
 0x200   :  { %v2745_v51 = vpop.f32.mrb[80].mxu1  ;;  %v1306_v22 = vpop.f32.mrb[81].mxu0 }
 0x201   :  { %v2747_v47 = vpop.f32.mrb[81].mxu1  ;;  %v4367_v52 = vpack.c.bf16 %v1306_v22, %v1304_v0  ;;  %v1308_v1 = vpop.f32.mrb[82].mxu0 }
 0x202   :  { %v4461_v56 = vpack.c.bf16 %v2747_v47, %v2745_v51  ;;  %v2749_v40 = vpop.f32.mrb[82].mxu1  ;;  %v1310_v4 = vpop.f32.mrb[83].mxu0 }
 0x203   :  { %v2751_v57 = vpop.f32.mrb[83].mxu1  ;;  %2025 = vst [vmem:[#allocation10 + $0xd0] sm:$0xff] %v4367_v52  ;;  %v4370_v33 = vpack.c.bf16 %v1310_v4, %v1308_v1 }
 0x204   :  { %3850 = vst [vmem:[#allocation11 + $0xc0] sm:$0xff] %v4461_v56  ;;  %v4464_v5 = vpack.c.bf16 %v2751_v57, %v2749_v40  ;;  %3047 = vmatmul.mubr.bf16.gmra.mrb[188].mxu0 %v5326_v21 }
 0x205   :  { %3240 = vmatmul.mubr.bf16.gmra.mrb[188].mxu1 %v5326_v21  ;;  %2028 = vst [vmem:[#allocation10 + $0xe8] sm:$0xff] %v4370_v33 }
 0x206   :  { %3853 = vst [vmem:[#allocation11 + $0xd8] sm:$0xff] %v4464_v5 }
 0x207   :  { %v1314_v13 = vpop.f32.mrb[84].mxu0 }
 0x208   :  { %v2755_v9 = vpop.f32.mrb[84].mxu1  ;;  %v1316_v27 = vpop.f32.mrb[85].mxu0 }
 0x209   :  { %v2757_v28 = vpop.f32.mrb[85].mxu1  ;;  %v4373_v7 = vpack.c.bf16 %v1316_v27, %v1314_v13  ;;  %v1318_v11 = vpop.f32.mrb[86].mxu0 }
 0x20a   :  { %v4467_v3 = vpack.c.bf16 %v2757_v28, %v2755_v9  ;;  %v2759_v10 = vpop.f32.mrb[86].mxu1  ;;  %v1320_v2 = vpop.f32.mrb[87].mxu0 }
 0x20b   :  { %v2761_v16 = vpop.f32.mrb[87].mxu1  ;;  %2031 = vst [vmem:[#allocation10 + $0x100] sm:$0xff] %v4373_v7  ;;  %v4376_v17 = vpack.c.bf16 %v1320_v2, %v1318_v11 }
 0x20c   :  { %3856 = vst [vmem:[#allocation11 + $0xf0] sm:$0xff] %v4467_v3  ;;  %v4470_v50 = vpack.c.bf16 %v2761_v16, %v2759_v10 }
 0x20d   :  { %2034 = vst [vmem:[#allocation10 + $0x118] sm:$0xff] %v4376_v17 }
 0x20e   :  { %3859 = vst [vmem:[#allocation11 + $0x108] sm:$0xff] %v4470_v50 }
 0x20f   :  { %v1324_v54 = vpop.f32.mrb[88].mxu0 }
 0x210   :  { %v2765_v21 = vpop.f32.mrb[88].mxu1  ;;  %v1326_v26 = vpop.f32.mrb[89].mxu0 }
 0x211   :  { %v2767_v19 = vpop.f32.mrb[89].mxu1  ;;  %v4379_v41 = vpack.c.bf16 %v1326_v26, %v1324_v54  ;;  %v1328_v6 = vpop.f32.mrb[90].mxu0 }
 0x212   :  { %v4473_v29 = vpack.c.bf16 %v2767_v19, %v2765_v21  ;;  %v2769_v60 = vpop.f32.mrb[90].mxu1  ;;  %v1330_v23 = vpop.f32.mrb[91].mxu0 }
 0x213   :  { %v2771_v62 = vpop.f32.mrb[91].mxu1  ;;  %2037 = vst [vmem:[#allocation10 + $0x130] sm:$0xff] %v4379_v41  ;;  %v4382_v36 = vpack.c.bf16 %v1330_v23, %v1328_v6 }
 0x214   :  { %3862 = vst [vmem:[#allocation11 + $0x120] sm:$0xff] %v4473_v29  ;;  %v4476_v18 = vpack.c.bf16 %v2771_v62, %v2769_v60 }
 0x215   :  { %2040 = vst [vmem:[#allocation10 + $0x148] sm:$0xff] %v4382_v36 }
 0x216   :  { %3865 = vst [vmem:[#allocation11 + $0x138] sm:$0xff] %v4476_v18 }
 0x217   :  { %v1334_v45 = vpop.f32.mrb[92].mxu0 }
 0x218   :  { %v2775_v63 = vpop.f32.mrb[92].mxu1  ;;  %v1336_v32 = vpop.f32.mrb[93].mxu0 }
 0x219   :  { %v2777_v49 = vpop.f32.mrb[93].mxu1  ;;  %v4385_v35 = vpack.c.bf16 %v1336_v32, %v1334_v45  ;;  %v1338_v14 = vpop.f32.mrb[94].mxu0 }
 0x21a   :  { %v4479_v30 = vpack.c.bf16 %v2777_v49, %v2775_v63  ;;  %v2779_v46 = vpop.f32.mrb[94].mxu1  ;;  %v1340_v42 = vpop.f32.mrb[95].mxu0 }
 0x21b   :  { %v2781_v43 = vpop.f32.mrb[95].mxu1  ;;  %2043 = vst [vmem:[#allocation10 + $0x160] sm:$0xff] %v4385_v35  ;;  %v4388_v12 = vpack.c.bf16 %v1340_v42, %v1338_v14 }
 0x21c   :  { %3868 = vst [vmem:[#allocation11 + $0x150] sm:$0xff] %v4479_v30  ;;  %v4482_v25 = vpack.c.bf16 %v2781_v43, %v2779_v46 }
 0x21d   :  { %2046 = vst [vmem:[#allocation10 + $0x178] sm:$0xff] %v4388_v12 }
 0x21e   :  { %3871 = vst [vmem:[#allocation11 + $0x168] sm:$0xff] %v4482_v25 }
 0x21f   :  { %v1344_v24 = vpop.f32.mrb[96].mxu0 }
 0x220   :  { %v2785_v34 = vpop.f32.mrb[96].mxu1  ;;  %v1346_v37 = vpop.f32.mrb[97].mxu0 }
 0x221   :  { %v2787_v38 = vpop.f32.mrb[97].mxu1  ;;  %v4391_v31 = vpack.c.bf16 %v1346_v37, %v1344_v24  ;;  %v1348_v53 = vpop.f32.mrb[98].mxu0 }
 0x222   :  { %v4485_v44 = vpack.c.bf16 %v2787_v38, %v2785_v34  ;;  %v2789_v48 = vpop.f32.mrb[98].mxu1  ;;  %v1350_v8 = vpop.f32.mrb[99].mxu0 }
 0x223   :  { %v2791_v15 = vpop.f32.mrb[99].mxu1  ;;  %2049 = vst [vmem:[#allocation10 + $0x190] sm:$0xff] %v4391_v31  ;;  %v4394_v55 = vpack.c.bf16 %v1350_v8, %v1348_v53 }
 0x224   :  { %3874 = vst [vmem:[#allocation11 + $0x180] sm:$0xff] %v4485_v44  ;;  %v4488_v58 = vpack.c.bf16 %v2791_v15, %v2789_v48 }
 0x225   :  { %2052 = vst [vmem:[#allocation10 + $0x1a8] sm:$0xff] %v4394_v55 }
 0x226   :  { %3877 = vst [vmem:[#allocation11 + $0x198] sm:$0xff] %v4488_v58 }
 0x227   :  { %v1354_v39 = vpop.f32.mrb[100].mxu0 }
 0x228   :  { %v2795_v61 = vpop.f32.mrb[100].mxu1  ;;  %v1356_v20 = vpop.f32.mrb[101].mxu0 }
 0x229   :  { %v2797_v59 = vpop.f32.mrb[101].mxu1  ;;  %v4397_v0 = vpack.c.bf16 %v1356_v20, %v1354_v39  ;;  %v1358_v22 = vpop.f32.mrb[102].mxu0 }
 0x22a   :  { %v4491_v51 = vpack.c.bf16 %v2797_v59, %v2795_v61  ;;  %v2799_v47 = vpop.f32.mrb[102].mxu1  ;;  %v1360_v52 = vpop.f32.mrb[103].mxu0 }
 0x22b   :  { %v2801_v56 = vpop.f32.mrb[103].mxu1  ;;  %2055 = vst [vmem:[#allocation10 + $0x1c0] sm:$0xff] %v4397_v0  ;;  %v4400_v1 = vpack.c.bf16 %v1360_v52, %v1358_v22 }
 0x22c   :  { %3880 = vst [vmem:[#allocation11 + $0x1b0] sm:$0xff] %v4491_v51  ;;  %v4494_v40 = vpack.c.bf16 %v2801_v56, %v2799_v47 }
 0x22d   :  { %2058 = vst [vmem:[#allocation10 + $0x1d8] sm:$0xff] %v4400_v1 }
 0x22e   :  { %3883 = vst [vmem:[#allocation11 + $0x1c8] sm:$0xff] %v4494_v40 }
 0x22f   :  { %v1364_v4 = vpop.f32.mrb[104].mxu0 }
 0x230   :  { %v2805_v57 = vpop.f32.mrb[104].mxu1  ;;  %v1366_v33 = vpop.f32.mrb[105].mxu0 }
 0x231   :  { %v2807_v5 = vpop.f32.mrb[105].mxu1  ;;  %v4403_v13 = vpack.c.bf16 %v1366_v33, %v1364_v4  ;;  %v1368_v27 = vpop.f32.mrb[106].mxu0 }
 0x232   :  { %v4497_v9 = vpack.c.bf16 %v2807_v5, %v2805_v57  ;;  %v2809_v28 = vpop.f32.mrb[106].mxu1  ;;  %v1370_v7 = vpop.f32.mrb[107].mxu0 }
 0x233   :  { %v2811_v3 = vpop.f32.mrb[107].mxu1  ;;  %2061 = vst [vmem:[#allocation10 + $0x1f0] sm:$0xff] %v4403_v13  ;;  %v4406_v11 = vpack.c.bf16 %v1370_v7, %v1368_v27 }
 0x234   :  { %3886 = vst [vmem:[#allocation11 + $0x1e0] sm:$0xff] %v4497_v9  ;;  %v4500_v10 = vpack.c.bf16 %v2811_v3, %v2809_v28 }
 0x235   :  { %2064 = vst [vmem:[#allocation10 + $0x208] sm:$0xff] %v4406_v11 }
 0x236   :  { %3889 = vst [vmem:[#allocation11 + $0x1f8] sm:$0xff] %v4500_v10 }
 0x237   :  { %v1374_v2 = vpop.f32.mrb[108].mxu0 }
 0x238   :  { %v2815_v16 = vpop.f32.mrb[108].mxu1  ;;  %v1376_v17 = vpop.f32.mrb[109].mxu0 }
 0x239   :  { %v2817_v50 = vpop.f32.mrb[109].mxu1  ;;  %v4409_v54 = vpack.c.bf16 %v1376_v17, %v1374_v2  ;;  %v1378_v26 = vpop.f32.mrb[110].mxu0 }
 0x23a   :  { %v4503_v21 = vpack.c.bf16 %v2817_v50, %v2815_v16  ;;  %v2819_v19 = vpop.f32.mrb[110].mxu1  ;;  %v1380_v41 = vpop.f32.mrb[111].mxu0 }
 0x23b   :  { %v2821_v29 = vpop.f32.mrb[111].mxu1  ;;  %2067 = vst [vmem:[#allocation10 + $0x220] sm:$0xff] %v4409_v54  ;;  %v4412_v6 = vpack.c.bf16 %v1380_v41, %v1378_v26 }
 0x23c   :  { %3892 = vst [vmem:[#allocation11 + $0x210] sm:$0xff] %v4503_v21  ;;  %v4506_v60 = vpack.c.bf16 %v2821_v29, %v2819_v19 }
 0x23d   :  { %2070 = vst [vmem:[#allocation10 + $0x238] sm:$0xff] %v4412_v6 }
 0x23e   :  { %3895 = vst [vmem:[#allocation11 + $0x228] sm:$0xff] %v4506_v60 }
 0x23f   :  { %v1384_v23 = vpop.f32.mrb[112].mxu0 }
 0x240   :  { %v2825_v62 = vpop.f32.mrb[112].mxu1  ;;  %v1386_v36 = vpop.f32.mrb[113].mxu0 }
 0x241   :  { %v2827_v18 = vpop.f32.mrb[113].mxu1  ;;  %v4415_v45 = vpack.c.bf16 %v1386_v36, %v1384_v23  ;;  %v1388_v32 = vpop.f32.mrb[114].mxu0 }
 0x242   :  { %v4509_v63 = vpack.c.bf16 %v2827_v18, %v2825_v62  ;;  %v2829_v49 = vpop.f32.mrb[114].mxu1  ;;  %v1390_v35 = vpop.f32.mrb[115].mxu0 }
 0x243   :  { %v2831_v30 = vpop.f32.mrb[115].mxu1  ;;  %2073 = vst [vmem:[#allocation10 + $0x250] sm:$0xff] %v4415_v45  ;;  %v4418_v14 = vpack.c.bf16 %v1390_v35, %v1388_v32 }
 0x244   :  { %3898 = vst [vmem:[#allocation11 + $0x240] sm:$0xff] %v4509_v63  ;;  %v4512_v46 = vpack.c.bf16 %v2831_v30, %v2829_v49 }
 0x245   :  { %2076 = vst [vmem:[#allocation10 + $0x268] sm:$0xff] %v4418_v14 }
 0x246   :  { %3901 = vst [vmem:[#allocation11 + $0x258] sm:$0xff] %v4512_v46 }
 0x247   :  { %v1394_v42 = vpop.f32.mrb[116].mxu0 }
 0x248   :  { %v2835_v43 = vpop.f32.mrb[116].mxu1  ;;  %v1396_v12 = vpop.f32.mrb[117].mxu0 }
 0x249   :  { %v2837_v25 = vpop.f32.mrb[117].mxu1  ;;  %v4421_v24 = vpack.c.bf16 %v1396_v12, %v1394_v42  ;;  %v1398_v37 = vpop.f32.mrb[118].mxu0 }
 0x24a   :  { %v4515_v34 = vpack.c.bf16 %v2837_v25, %v2835_v43  ;;  %v2839_v38 = vpop.f32.mrb[118].mxu1  ;;  %v1400_v31 = vpop.f32.mrb[119].mxu0 }
 0x24b   :  { %v2841_v44 = vpop.f32.mrb[119].mxu1  ;;  %2079 = vst [vmem:[#allocation10 + $0x280] sm:$0xff] %v4421_v24  ;;  %v4424_v53 = vpack.c.bf16 %v1400_v31, %v1398_v37 }
 0x24c   :  { %3904 = vst [vmem:[#allocation11 + $0x270] sm:$0xff] %v4515_v34  ;;  %v4518_v48 = vpack.c.bf16 %v2841_v44, %v2839_v38 }
 0x24d   :  { %2082 = vst [vmem:[#allocation10 + $0x298] sm:$0xff] %v4424_v53 }
 0x24e   :  { %3907 = vst [vmem:[#allocation11 + $0x288] sm:$0xff] %v4518_v48 }
 0x24f   :  { %v1404_v8 = vpop.f32.mrb[120].mxu0 }
 0x250   :  { %v2845_v15 = vpop.f32.mrb[120].mxu1  ;;  %v1406_v55 = vpop.f32.mrb[121].mxu0 }
 0x251   :  { %v2847_v58 = vpop.f32.mrb[121].mxu1  ;;  %v4427_v39 = vpack.c.bf16 %v1406_v55, %v1404_v8  ;;  %v1408_v20 = vpop.f32.mrb[122].mxu0 }
 0x252   :  { %v4521_v61 = vpack.c.bf16 %v2847_v58, %v2845_v15  ;;  %v2849_v59 = vpop.f32.mrb[122].mxu1  ;;  %v1410_v0 = vpop.f32.mrb[123].mxu0 }
 0x253   :  { %v2851_v51 = vpop.f32.mrb[123].mxu1  ;;  %2085 = vst [vmem:[#allocation10 + $0x2b0] sm:$0xff] %v4427_v39  ;;  %v4430_v22 = vpack.c.bf16 %v1410_v0, %v1408_v20 }
 0x254   :  { %3910 = vst [vmem:[#allocation11 + $0x2a0] sm:$0xff] %v4521_v61  ;;  %v4524_v47 = vpack.c.bf16 %v2851_v51, %v2849_v59 }
 0x255   :  { %2088 = vst [vmem:[#allocation10 + $0x2c8] sm:$0xff] %v4430_v22 }
 0x256   :  { %3913 = vst [vmem:[#allocation11 + $0x2b8] sm:$0xff] %v4524_v47 }
 0x257   :  { %v1414_v52 = vpop.f32.mrb[124].mxu0 }
 0x258   :  { %v2855_v56 = vpop.f32.mrb[124].mxu1  ;;  %v1416_v1 = vpop.f32.mrb[125].mxu0 }
 0x259   :  { %v2857_v40 = vpop.f32.mrb[125].mxu1  ;;  %v4433_v4 = vpack.c.bf16 %v1416_v1, %v1414_v52  ;;  %v1418_v33 = vpop.f32.mrb[126].mxu0 }
 0x25a   :  { %v4527_v57 = vpack.c.bf16 %v2857_v40, %v2855_v56  ;;  %v2859_v5 = vpop.f32.mrb[126].mxu1  ;;  %v1420_v13 = vpop.f32.mrb[127].mxu0 }
 0x25b   :  { %v2861_v9 = vpop.f32.mrb[127].mxu1  ;;  %2091 = vst [vmem:[#allocation10 + $0x2e0] sm:$0xff] %v4433_v4  ;;  %v4436_v27 = vpack.c.bf16 %v1420_v13, %v1418_v33 }
 0x25c   :  { %3916 = vst [vmem:[#allocation11 + $0x2d0] sm:$0xff] %v4527_v57  ;;  %v4530_v28 = vpack.c.bf16 %v2861_v9, %v2859_v5 }
 0x25d   :  { %2094 = vst [vmem:[#allocation10 + $0x2f8] sm:$0xff] %v4436_v27 }
 0x25e   :  { %3919 = vst [vmem:[#allocation11 + $0x2e8] sm:$0xff] %v4530_v28 }
 0x25f   :  { %4930 = shalt.err (!%p4927_p8)
}
 0x260   :  { %s4931_s20 = scalar_lea.hbm %s5428_s4, 12288 }
 0x261   :  { %p4932_p9 = scmp.ne.s32.totalorder %s5428_s4, %s4931_s20  ;;  %p4935_p10 = scmp.lt.u32.totalorder %s4931_s20, %s5428_s4 }
 0x263   :  { %p4937_p11 = pnand %p4935_p10, %p4932_p9 }
 0x265   :  { %4940 = shalt.err (!%p4937_p11)
}
 0x266   :  { %3933 = dma.vmem_to_hbm [thread:$0]  %s3928_s1, 12288, %s5428_s4, [#allocation4], %s4978_s0, %s4978_s0, %s4979_s21   ;;  %v2898_v7 = vpop.f32.mrb[128].mxu0  ;;  %v3091_v3 = vpop.f32.mrb[128].mxu1 }
 0x267   :  { %v2900_v11 = vpop.f32.mrb[129].mxu0  ;;  %v3093_v10 = vpop.f32.mrb[129].mxu1  ;;  %s4982_s4 = smov [#allocation11]  }
 0x268   :  { %v4438_v2 = vpack.c.bf16 %v2900_v11, %v2898_v7  ;;  %v4439_v16 = vpack.c.bf16 %v3093_v10, %v3091_v3  ;;  %v2902_v17 = vpop.f32.mrb[130].mxu0  ;;  %v3095_v50 = vpop.f32.mrb[130].mxu1  ;;  %s3939_s28 = sshll.u32 %s4982_s4, 4  ;;  %s3940_s28 = int_to_ptr.vmem [resolvable:$true] %s3939_s28 }
 0x269   :  { %v2904_v54 = vpop.f32.mrb[131].mxu0  ;;  %v3097_v21 = vpop.f32.mrb[131].mxu1  ;;  %s4941_s29 = scalar_lea.vmem %s3940_s28, 12288  ;;  %p4946_p13 = scmp.lt.s32.totalorder %s3940_s28, %s3940_s28 }
 0x26a   :  { %3827 = vst [vmem:[#allocation11 + $0x8] sm:$0xff] %v4438_v2  ;;  %3828 = vst [vmem:[#allocation11 + $0x10] sm:$0xff] %v4439_v16  ;;  %v4441_v26 = vpack.c.bf16 %v2904_v54, %v2902_v17  ;;  %v4442_v19 = vpack.c.bf16 %v3097_v21, %v3095_v50  ;;  %v2908_v41 = vpop.f32.mrb[132].mxu0  ;;  %v3101_v29 = vpop.f32.mrb[132].mxu1  ;;  %p4942_p12 = scmp.ne.s32.totalorder %s3940_s28, %s4941_s29  ;;  %p4947_p0 = scmp.lt.s32.totalorder %s4941_s29, %s4941_s29 }
 0x26b   :  { %v2910_v6 = vpop.f32.mrb[133].mxu0  ;;  %v3103_v60 = vpop.f32.mrb[133].mxu1 }
 0x26c   :  { %3830 = vst [vmem:[#allocation11 + $0x20] sm:$0xff] %v4441_v26  ;;  %3831 = vst [vmem:[#allocation11 + $0x28] sm:$0xff] %v4442_v19  ;;  %v4444_v23 = vpack.c.bf16 %v2910_v6, %v2908_v41  ;;  %v4445_v62 = vpack.c.bf16 %v3103_v60, %v3101_v29  ;;  %v2912_v36 = vpop.f32.mrb[134].mxu0  ;;  %v3105_v18 = vpop.f32.mrb[134].mxu1  ;;  %p4948_p1 = por %p4947_p0, %p4946_p13 }
 0x26d   :  { %v2914_v45 = vpop.f32.mrb[135].mxu0  ;;  %v3107_v63 = vpop.f32.mrb[135].mxu1 }
 0x26e   :  { %3833 = vst [vmem:[#allocation11 + $0x38] sm:$0xff] %v4444_v23  ;;  %3834 = vst [vmem:[#allocation11 + $0x40] sm:$0xff] %v4445_v62  ;;  %v4447_v32 = vpack.c.bf16 %v2914_v45, %v2912_v36  ;;  %v4448_v49 = vpack.c.bf16 %v3107_v63, %v3105_v18  ;;  %p4949_p2 = pnand %p4948_p1, %p4942_p12 }
 0x26f   :  { %v2918_v35 = vpop.f32.mrb[136].mxu0 }
 0x270   :  { %3836 = vst [vmem:[#allocation11 + $0x50] sm:$0xff] %v4447_v32  ;;  %3837 = vst [vmem:[#allocation11 + $0x58] sm:$0xff] %v4448_v49  ;;  %v3111_v30 = vpop.f32.mrb[136].mxu1  ;;  %v2920_v14 = vpop.f32.mrb[137].mxu0 }
 0x271   :  { %v3113_v46 = vpop.f32.mrb[137].mxu1  ;;  %v4450_v42 = vpack.c.bf16 %v2920_v14, %v2918_v35  ;;  %v2922_v12 = vpop.f32.mrb[138].mxu0 }
 0x272   :  { %v4451_v43 = vpack.c.bf16 %v3113_v46, %v3111_v30  ;;  %v3115_v25 = vpop.f32.mrb[138].mxu1  ;;  %v2924_v24 = vpop.f32.mrb[139].mxu0 }
 0x273   :  { %v3117_v34 = vpop.f32.mrb[139].mxu1  ;;  %3839 = vst [vmem:[#allocation11 + $0x68] sm:$0xff] %v4450_v42  ;;  %v4453_v37 = vpack.c.bf16 %v2924_v24, %v2922_v12 }
 0x274   :  { %3840 = vst [vmem:[#allocation11 + $0x70] sm:$0xff] %v4451_v43  ;;  %v4454_v38 = vpack.c.bf16 %v3117_v34, %v3115_v25 }
 0x275   :  { %3842 = vst [vmem:[#allocation11 + $0x80] sm:$0xff] %v4453_v37 }
 0x276   :  { %3843 = vst [vmem:[#allocation11 + $0x88] sm:$0xff] %v4454_v38 }
 0x277   :  { %v2928_v31 = vpop.f32.mrb[140].mxu0 }
 0x278   :  { %v3121_v44 = vpop.f32.mrb[140].mxu1  ;;  %v2930_v53 = vpop.f32.mrb[141].mxu0 }
 0x279   :  { %v3123_v48 = vpop.f32.mrb[141].mxu1  ;;  %v4456_v8 = vpack.c.bf16 %v2930_v53, %v2928_v31  ;;  %v2932_v55 = vpop.f32.mrb[142].mxu0 }
 0x27a   :  { %v4457_v15 = vpack.c.bf16 %v3123_v48, %v3121_v44  ;;  %v3125_v58 = vpop.f32.mrb[142].mxu1  ;;  %v2934_v39 = vpop.f32.mrb[143].mxu0 }
 0x27b   :  { %v3127_v61 = vpop.f32.mrb[143].mxu1  ;;  %3845 = vst [vmem:[#allocation11 + $0x98] sm:$0xff] %v4456_v8  ;;  %v4459_v20 = vpack.c.bf16 %v2934_v39, %v2932_v55 }
 0x27c   :  { %3846 = vst [vmem:[#allocation11 + $0xa0] sm:$0xff] %v4457_v15  ;;  %v4460_v59 = vpack.c.bf16 %v3127_v61, %v3125_v58 }
 0x27d   :  { %3848 = vst [vmem:[#allocation11 + $0xb0] sm:$0xff] %v4459_v20 }
 0x27e   :  { %3849 = vst [vmem:[#allocation11 + $0xb8] sm:$0xff] %v4460_v59 }
 0x27f   :  { %v2938_v0 = vpop.f32.mrb[144].mxu0 }
 0x280   :  { %v3131_v51 = vpop.f32.mrb[144].mxu1  ;;  %v2940_v22 = vpop.f32.mrb[145].mxu0 }
 0x281   :  { %v3133_v47 = vpop.f32.mrb[145].mxu1  ;;  %v4462_v52 = vpack.c.bf16 %v2940_v22, %v2938_v0  ;;  %v2942_v1 = vpop.f32.mrb[146].mxu0 }
 0x282   :  { %v4463_v56 = vpack.c.bf16 %v3133_v47, %v3131_v51  ;;  %v3135_v40 = vpop.f32.mrb[146].mxu1  ;;  %v2944_v4 = vpop.f32.mrb[147].mxu0 }
 0x283   :  { %v3137_v57 = vpop.f32.mrb[147].mxu1  ;;  %3851 = vst [vmem:[#allocation11 + $0xc8] sm:$0xff] %v4462_v52  ;;  %v4465_v33 = vpack.c.bf16 %v2944_v4, %v2942_v1 }
 0x284   :  { %3852 = vst [vmem:[#allocation11 + $0xd0] sm:$0xff] %v4463_v56  ;;  %v4466_v5 = vpack.c.bf16 %v3137_v57, %v3135_v40 }
 0x285   :  { %3854 = vst [vmem:[#allocation11 + $0xe0] sm:$0xff] %v4465_v33 }
 0x286   :  { %3855 = vst [vmem:[#allocation11 + $0xe8] sm:$0xff] %v4466_v5 }
 0x287   :  { %v2948_v13 = vpop.f32.mrb[148].mxu0 }
 0x288   :  { %v3141_v9 = vpop.f32.mrb[148].mxu1  ;;  %v2950_v27 = vpop.f32.mrb[149].mxu0 }
 0x289   :  { %v3143_v28 = vpop.f32.mrb[149].mxu1  ;;  %v4468_v7 = vpack.c.bf16 %v2950_v27, %v2948_v13  ;;  %v2952_v11 = vpop.f32.mrb[150].mxu0 }
 0x28a   :  { %v4469_v3 = vpack.c.bf16 %v3143_v28, %v3141_v9  ;;  %v3145_v10 = vpop.f32.mrb[150].mxu1  ;;  %v2954_v2 = vpop.f32.mrb[151].mxu0 }
 0x28b   :  { %v3147_v16 = vpop.f32.mrb[151].mxu1  ;;  %3857 = vst [vmem:[#allocation11 + $0xf8] sm:$0xff] %v4468_v7  ;;  %v4471_v17 = vpack.c.bf16 %v2954_v2, %v2952_v11 }
 0x28c   :  { %3858 = vst [vmem:[#allocation11 + $0x100] sm:$0xff] %v4469_v3  ;;  %v4472_v50 = vpack.c.bf16 %v3147_v16, %v3145_v10 }
 0x28d   :  { %3860 = vst [vmem:[#allocation11 + $0x110] sm:$0xff] %v4471_v17 }
 0x28e   :  { %3861 = vst [vmem:[#allocation11 + $0x118] sm:$0xff] %v4472_v50 }
 0x28f   :  { %v2958_v54 = vpop.f32.mrb[152].mxu0 }
 0x290   :  { %v3151_v21 = vpop.f32.mrb[152].mxu1  ;;  %v2960_v26 = vpop.f32.mrb[153].mxu0 }
 0x291   :  { %v3153_v19 = vpop.f32.mrb[153].mxu1  ;;  %v4474_v41 = vpack.c.bf16 %v2960_v26, %v2958_v54  ;;  %v2962_v6 = vpop.f32.mrb[154].mxu0 }
 0x292   :  { %v4475_v29 = vpack.c.bf16 %v3153_v19, %v3151_v21  ;;  %v3155_v60 = vpop.f32.mrb[154].mxu1  ;;  %v2964_v23 = vpop.f32.mrb[155].mxu0 }
 0x293   :  { %v3157_v62 = vpop.f32.mrb[155].mxu1  ;;  %3863 = vst [vmem:[#allocation11 + $0x128] sm:$0xff] %v4474_v41  ;;  %v4477_v36 = vpack.c.bf16 %v2964_v23, %v2962_v6 }
 0x294   :  { %3864 = vst [vmem:[#allocation11 + $0x130] sm:$0xff] %v4475_v29  ;;  %v4478_v18 = vpack.c.bf16 %v3157_v62, %v3155_v60 }
 0x295   :  { %3866 = vst [vmem:[#allocation11 + $0x140] sm:$0xff] %v4477_v36 }
 0x296   :  { %3867 = vst [vmem:[#allocation11 + $0x148] sm:$0xff] %v4478_v18 }
 0x297   :  { %v2968_v45 = vpop.f32.mrb[156].mxu0 }
 0x298   :  { %v3161_v63 = vpop.f32.mrb[156].mxu1  ;;  %v2970_v32 = vpop.f32.mrb[157].mxu0 }
 0x299   :  { %v3163_v49 = vpop.f32.mrb[157].mxu1  ;;  %v4480_v35 = vpack.c.bf16 %v2970_v32, %v2968_v45  ;;  %v2972_v14 = vpop.f32.mrb[158].mxu0 }
 0x29a   :  { %v4481_v30 = vpack.c.bf16 %v3163_v49, %v3161_v63  ;;  %v3165_v46 = vpop.f32.mrb[158].mxu1  ;;  %v2974_v42 = vpop.f32.mrb[159].mxu0 }
 0x29b   :  { %v3167_v43 = vpop.f32.mrb[159].mxu1  ;;  %3869 = vst [vmem:[#allocation11 + $0x158] sm:$0xff] %v4480_v35  ;;  %v4483_v12 = vpack.c.bf16 %v2974_v42, %v2972_v14 }
 0x29c   :  { %3870 = vst [vmem:[#allocation11 + $0x160] sm:$0xff] %v4481_v30  ;;  %v4484_v25 = vpack.c.bf16 %v3167_v43, %v3165_v46 }
 0x29d   :  { %3872 = vst [vmem:[#allocation11 + $0x170] sm:$0xff] %v4483_v12 }
 0x29e   :  { %3873 = vst [vmem:[#allocation11 + $0x178] sm:$0xff] %v4484_v25 }
 0x29f   :  { %v2978_v24 = vpop.f32.mrb[160].mxu0 }
 0x2a0   :  { %v3171_v34 = vpop.f32.mrb[160].mxu1  ;;  %v2980_v37 = vpop.f32.mrb[161].mxu0 }
 0x2a1   :  { %v3173_v38 = vpop.f32.mrb[161].mxu1  ;;  %v4486_v31 = vpack.c.bf16 %v2980_v37, %v2978_v24  ;;  %v2982_v53 = vpop.f32.mrb[162].mxu0 }
 0x2a2   :  { %v4487_v44 = vpack.c.bf16 %v3173_v38, %v3171_v34  ;;  %v3175_v48 = vpop.f32.mrb[162].mxu1  ;;  %v2984_v8 = vpop.f32.mrb[163].mxu0 }
 0x2a3   :  { %v3177_v15 = vpop.f32.mrb[163].mxu1  ;;  %3875 = vst [vmem:[#allocation11 + $0x188] sm:$0xff] %v4486_v31  ;;  %v4489_v55 = vpack.c.bf16 %v2984_v8, %v2982_v53 }
 0x2a4   :  { %3876 = vst [vmem:[#allocation11 + $0x190] sm:$0xff] %v4487_v44  ;;  %v4490_v58 = vpack.c.bf16 %v3177_v15, %v3175_v48 }
 0x2a5   :  { %3878 = vst [vmem:[#allocation11 + $0x1a0] sm:$0xff] %v4489_v55 }
 0x2a6   :  { %3879 = vst [vmem:[#allocation11 + $0x1a8] sm:$0xff] %v4490_v58 }
 0x2a7   :  { %v2988_v39 = vpop.f32.mrb[164].mxu0 }
 0x2a8   :  { %v3181_v61 = vpop.f32.mrb[164].mxu1  ;;  %v2990_v20 = vpop.f32.mrb[165].mxu0 }
 0x2a9   :  { %v3183_v59 = vpop.f32.mrb[165].mxu1  ;;  %v4492_v0 = vpack.c.bf16 %v2990_v20, %v2988_v39  ;;  %v2992_v22 = vpop.f32.mrb[166].mxu0 }
 0x2aa   :  { %v4493_v51 = vpack.c.bf16 %v3183_v59, %v3181_v61  ;;  %v3185_v47 = vpop.f32.mrb[166].mxu1  ;;  %v2994_v52 = vpop.f32.mrb[167].mxu0 }
 0x2ab   :  { %v3187_v56 = vpop.f32.mrb[167].mxu1  ;;  %3881 = vst [vmem:[#allocation11 + $0x1b8] sm:$0xff] %v4492_v0  ;;  %v4495_v1 = vpack.c.bf16 %v2994_v52, %v2992_v22 }
 0x2ac   :  { %3882 = vst [vmem:[#allocation11 + $0x1c0] sm:$0xff] %v4493_v51  ;;  %v4496_v40 = vpack.c.bf16 %v3187_v56, %v3185_v47 }
 0x2ad   :  { %3884 = vst [vmem:[#allocation11 + $0x1d0] sm:$0xff] %v4495_v1 }
 0x2ae   :  { %3885 = vst [vmem:[#allocation11 + $0x1d8] sm:$0xff] %v4496_v40 }
 0x2af   :  { %v2998_v4 = vpop.f32.mrb[168].mxu0 }
 0x2b0   :  { %v3191_v57 = vpop.f32.mrb[168].mxu1  ;;  %v3000_v33 = vpop.f32.mrb[169].mxu0 }
 0x2b1   :  { %v3193_v5 = vpop.f32.mrb[169].mxu1  ;;  %v4498_v13 = vpack.c.bf16 %v3000_v33, %v2998_v4  ;;  %v3002_v27 = vpop.f32.mrb[170].mxu0 }
 0x2b2   :  { %v4499_v9 = vpack.c.bf16 %v3193_v5, %v3191_v57  ;;  %v3195_v28 = vpop.f32.mrb[170].mxu1  ;;  %v3004_v7 = vpop.f32.mrb[171].mxu0 }
 0x2b3   :  { %v3197_v3 = vpop.f32.mrb[171].mxu1  ;;  %3887 = vst [vmem:[#allocation11 + $0x1e8] sm:$0xff] %v4498_v13  ;;  %v4501_v11 = vpack.c.bf16 %v3004_v7, %v3002_v27 }
 0x2b4   :  { %3888 = vst [vmem:[#allocation11 + $0x1f0] sm:$0xff] %v4499_v9  ;;  %v4502_v10 = vpack.c.bf16 %v3197_v3, %v3195_v28 }
 0x2b5   :  { %3890 = vst [vmem:[#allocation11 + $0x200] sm:$0xff] %v4501_v11 }
 0x2b6   :  { %3891 = vst [vmem:[#allocation11 + $0x208] sm:$0xff] %v4502_v10 }
 0x2b7   :  { %v3008_v2 = vpop.f32.mrb[172].mxu0 }
 0x2b8   :  { %v3201_v16 = vpop.f32.mrb[172].mxu1  ;;  %v3010_v17 = vpop.f32.mrb[173].mxu0 }
 0x2b9   :  { %v3203_v50 = vpop.f32.mrb[173].mxu1  ;;  %v4504_v54 = vpack.c.bf16 %v3010_v17, %v3008_v2  ;;  %v3012_v26 = vpop.f32.mrb[174].mxu0 }
 0x2ba   :  { %v4505_v21 = vpack.c.bf16 %v3203_v50, %v3201_v16  ;;  %v3205_v19 = vpop.f32.mrb[174].mxu1  ;;  %v3014_v41 = vpop.f32.mrb[175].mxu0 }
 0x2bb   :  { %v3207_v29 = vpop.f32.mrb[175].mxu1  ;;  %3893 = vst [vmem:[#allocation11 + $0x218] sm:$0xff] %v4504_v54  ;;  %v4507_v6 = vpack.c.bf16 %v3014_v41, %v3012_v26 }
 0x2bc   :  { %3894 = vst [vmem:[#allocation11 + $0x220] sm:$0xff] %v4505_v21  ;;  %v4508_v60 = vpack.c.bf16 %v3207_v29, %v3205_v19 }
 0x2bd   :  { %3896 = vst [vmem:[#allocation11 + $0x230] sm:$0xff] %v4507_v6 }
 0x2be   :  { %3897 = vst [vmem:[#allocation11 + $0x238] sm:$0xff] %v4508_v60 }
 0x2bf   :  { %v3018_v23 = vpop.f32.mrb[176].mxu0 }
 0x2c0   :  { %v3211_v62 = vpop.f32.mrb[176].mxu1  ;;  %v3020_v36 = vpop.f32.mrb[177].mxu0 }
 0x2c1   :  { %v3213_v18 = vpop.f32.mrb[177].mxu1  ;;  %v4510_v45 = vpack.c.bf16 %v3020_v36, %v3018_v23  ;;  %v3022_v32 = vpop.f32.mrb[178].mxu0 }
 0x2c2   :  { %v4511_v63 = vpack.c.bf16 %v3213_v18, %v3211_v62  ;;  %v3215_v49 = vpop.f32.mrb[178].mxu1  ;;  %v3024_v35 = vpop.f32.mrb[179].mxu0 }
 0x2c3   :  { %v3217_v30 = vpop.f32.mrb[179].mxu1  ;;  %3899 = vst [vmem:[#allocation11 + $0x248] sm:$0xff] %v4510_v45  ;;  %v4513_v14 = vpack.c.bf16 %v3024_v35, %v3022_v32 }
 0x2c4   :  { %3900 = vst [vmem:[#allocation11 + $0x250] sm:$0xff] %v4511_v63  ;;  %v4514_v46 = vpack.c.bf16 %v3217_v30, %v3215_v49 }
 0x2c5   :  { %3902 = vst [vmem:[#allocation11 + $0x260] sm:$0xff] %v4513_v14 }
 0x2c6   :  { %3903 = vst [vmem:[#allocation11 + $0x268] sm:$0xff] %v4514_v46 }
 0x2c7   :  { %v3028_v42 = vpop.f32.mrb[180].mxu0 }
 0x2c8   :  { %v3221_v43 = vpop.f32.mrb[180].mxu1  ;;  %v3030_v12 = vpop.f32.mrb[181].mxu0 }
 0x2c9   :  { %v3223_v25 = vpop.f32.mrb[181].mxu1  ;;  %v4516_v24 = vpack.c.bf16 %v3030_v12, %v3028_v42  ;;  %v3032_v37 = vpop.f32.mrb[182].mxu0 }
 0x2ca   :  { %v4517_v34 = vpack.c.bf16 %v3223_v25, %v3221_v43  ;;  %v3225_v38 = vpop.f32.mrb[182].mxu1  ;;  %v3034_v31 = vpop.f32.mrb[183].mxu0 }
 0x2cb   :  { %v3227_v44 = vpop.f32.mrb[183].mxu1  ;;  %3905 = vst [vmem:[#allocation11 + $0x278] sm:$0xff] %v4516_v24  ;;  %v4519_v53 = vpack.c.bf16 %v3034_v31, %v3032_v37 }
 0x2cc   :  { %3906 = vst [vmem:[#allocation11 + $0x280] sm:$0xff] %v4517_v34  ;;  %v4520_v48 = vpack.c.bf16 %v3227_v44, %v3225_v38 }
 0x2cd   :  { %3908 = vst [vmem:[#allocation11 + $0x290] sm:$0xff] %v4519_v53 }
 0x2ce   :  { %3909 = vst [vmem:[#allocation11 + $0x298] sm:$0xff] %v4520_v48 }
 0x2cf   :  { %v3038_v8 = vpop.f32.mrb[184].mxu0 }
 0x2d0   :  { %v3231_v15 = vpop.f32.mrb[184].mxu1  ;;  %v3040_v55 = vpop.f32.mrb[185].mxu0 }
 0x2d1   :  { %v3233_v58 = vpop.f32.mrb[185].mxu1  ;;  %v4522_v39 = vpack.c.bf16 %v3040_v55, %v3038_v8  ;;  %v3042_v20 = vpop.f32.mrb[186].mxu0 }
 0x2d2   :  { %v4523_v61 = vpack.c.bf16 %v3233_v58, %v3231_v15  ;;  %v3235_v59 = vpop.f32.mrb[186].mxu1  ;;  %v3044_v0 = vpop.f32.mrb[187].mxu0 }
 0x2d3   :  { %v3237_v51 = vpop.f32.mrb[187].mxu1  ;;  %3911 = vst [vmem:[#allocation11 + $0x2a8] sm:$0xff] %v4522_v39  ;;  %v4525_v22 = vpack.c.bf16 %v3044_v0, %v3042_v20 }
 0x2d4   :  { %3912 = vst [vmem:[#allocation11 + $0x2b0] sm:$0xff] %v4523_v61  ;;  %v4526_v47 = vpack.c.bf16 %v3237_v51, %v3235_v59 }
 0x2d5   :  { %3914 = vst [vmem:[#allocation11 + $0x2c0] sm:$0xff] %v4525_v22 }
 0x2d6   :  { %3915 = vst [vmem:[#allocation11 + $0x2c8] sm:$0xff] %v4526_v47 }
 0x2d7   :  { %v3048_v52 = vpop.f32.mrb[188].mxu0 }
 0x2d8   :  { %v3241_v56 = vpop.f32.mrb[188].mxu1  ;;  %v3050_v1 = vpop.f32.mrb[189].mxu0 }
 0x2d9   :  { %v3243_v40 = vpop.f32.mrb[189].mxu1  ;;  %v4528_v4 = vpack.c.bf16 %v3050_v1, %v3048_v52  ;;  %v3052_v33 = vpop.f32.mrb[190].mxu0 }
 0x2da   :  { %v4529_v57 = vpack.c.bf16 %v3243_v40, %v3241_v56  ;;  %v3245_v5 = vpop.f32.mrb[190].mxu1  ;;  %v3054_v13 = vpop.f32.mrb[191].mxu0 }
 0x2db   :  { %v3247_v9 = vpop.f32.mrb[191].mxu1  ;;  %3917 = vst [vmem:[#allocation11 + $0x2d8] sm:$0xff] %v4528_v4  ;;  %v4531_v27 = vpack.c.bf16 %v3054_v13, %v3052_v33 }
 0x2dc   :  { %3918 = vst [vmem:[#allocation11 + $0x2e0] sm:$0xff] %v4529_v57  ;;  %v4532_v28 = vpack.c.bf16 %v3247_v9, %v3245_v5 }
 0x2dd   :  { %3920 = vst [vmem:[#allocation11 + $0x2f0] sm:$0xff] %v4531_v27 }
 0x2de   :  { %3921 = vst [vmem:[#allocation11 + $0x2f8] sm:$0xff] %v4532_v28 }
 0x2df   :  { %4952 = shalt.err (!%p4949_p2)
}
 0x2e0   :  { %s4953_s7 = scalar_lea.hbm %s5429_s5, 12288 }
 0x2e1   :  { %p4954_p3 = scmp.ne.s32.totalorder %s5429_s5, %s4953_s7  ;;  %p4957_p4 = scmp.lt.u32.totalorder %s4953_s7, %s5429_s5 }
 0x2e3   :  { %p4959_p5 = pnand %p4957_p4, %p4954_p3 }
 0x2e5   :  { %4962 = shalt.err (!%p4959_p5)
}
 0x2e6   :  { %3945 = dma.vmem_to_hbm [thread:$0]  %s3940_s28, 12288, %s5429_s5, [#allocation12], %s4978_s0, %s4978_s0, %s4979_s21  }
 0x2e7   :  { %4969 = dma.done.wait [#allocation4], 12288  }
 0x2e8   :  { %4970 = vsyncadd [#allocation4], 4294955008 }
 0x2e9   :  { %4971 = dma.done.wait [#allocation12], 12288  }
 0x2ea   :  { %4972 = vsyncadd [#allocation12], 4294955008 }
 0x2eb   :  { %3952 = vsyncpa [#allocation3], 1 }
 0x2ec   :  { %3953 = vsyncpa [#allocation6], 1 }
 0x2ed   :  { %3954 = vsyncpa [#allocation9], 1 }
 0x2ee   :  { %3955 = vsyncpa [#allocation4], 1 }
 0x2ef   :  { %3956 = vsyncpa [#allocation12], 1 }

</bundles_post_ra>
